<compile_context>
chip_gen: v6e
topology: v6e:2x2x1
jax: 0.10.0
libtpu: 0.0.40
codegen_flags: <defaults>
</compile_context>

<pallas_src>
import functools

import jax
import jax.numpy as jnp
import numpy as np
from jax.experimental import pallas as pl
from jax.experimental.pallas import tpu as pltpu


def _kv_proj_cf_kernel(x_ref, w_ref, b_ref, out_ref, *, batch_tile: int):
    """kv = Conv3d(C, 2C, kernel_size=1)(x), computed channels-first per batch.

    x_ref  : (Bt, C, N)   channels-first activations (PyTorch memory order)
    w_ref  : (2C, C)      conv weight
    b_ref  : (2C, 1)      conv bias
    out_ref: (Bt, 2C, N)  channels-first conv output (contiguous per batch, so the
                          torch reshape-to-(N, 2C) scramble is a free reinterpretation)
    """
    w = w_ref[...]
    bias = b_ref[...]
    for b in range(batch_tile):          # static, small; one dense MXU matmul each
        out_ref[b] = jnp.dot(w, x_ref[b], preferred_element_type=jnp.float32) + bias


def _cross_attn_kernel(y_ref, kv_ref, wq_ref, bq_ref, s_ref, st_ref,
                       bsel_ref, bselt_ref, wp_ref, bp_ref, out_ref):
    """q conv + per-head L2 normalize + softmax cross-attention + output proj.

    y_ref    : (Bt, C)        queries (one spatial position each)
    kv_ref   : (Bt*N, 2C)     torch-scrambled kv tokens; lanes [0,C)=k, [C,2C)=v,
                              channel c belongs to head c // d
    wq_ref   : (C, C)         transposed q-conv weight   (x @ W^T layout)
    bq_ref   : (1, C)
    s_ref    : (C, H)         head selector: S[c, h] = 1 iff c // d == h
    st_ref   : (H, C)         S^T
    bsel_ref : (Bt, Bt*N)     batch selector: Bsel[b, j] = 1 iff j // N == b
    bselt_ref: (Bt*N, Bt)     Bsel^T
    wp_ref   : (C, C)         transposed proj-conv weight
    bp_ref   : (1, C)
    out_ref  : (Bt, C)
    """
    f32 = jnp.float32
    # F.normalize clamp: max(sqrt(ss), 1e-12) == sqrt(max(ss, 1e-24))
    eps2 = f32(1e-24)
    C = wq_ref.shape[0]

    S = s_ref[...]
    ST = st_ref[...]
    Bsel = bsel_ref[...]
    BselT = bselt_ref[...]

    # ---- q path: 1x1x1 conv + per-head L2 normalize, whole tile at once ----
    q = (jnp.dot(y_ref[...], wq_ref[...], preferred_element_type=f32)
         + bq_ref[...])                                                   # (Bt, C)
    q_ss = jnp.dot(q * q, S, preferred_element_type=f32)                  # (Bt, H)
    q_inv = jax.lax.rsqrt(jnp.maximum(q_ss, eps2))                        # (Bt, H) EUP
    qn = q * jnp.dot(q_inv, ST, preferred_element_type=f32)               # (Bt, C)

    # ---- k / v: scrambled kv tokens for the whole tile ----
    kv = kv_ref[...]                                                      # (Bt*N, 2C)
    k = kv[:, :C]                                                         # 128-aligned lane slice
    v = kv[:, C:]

    k_ss = jnp.dot(k * k, S, preferred_element_type=f32)                  # (Bt*N, H)
    k_inv = jax.lax.rsqrt(jnp.maximum(k_ss, eps2))                        # (Bt*N, H)

    # Broadcast each batch's normalized query to its N token rows (one K=Bt matmul).
    qn_rows = jnp.dot(BselT, qn, preferred_element_type=f32)              # (Bt*N, C)
    qk = jnp.dot(qn_rows * k, S, preferred_element_type=f32)              # (Bt*N, H)
    logits = qk * k_inv                                                   # (Bt*N, H)

    # Softmax over each batch's N tokens.  logits are inner products of L2-normalized
    # vectors, so |logits| <= 1; a per-head tile-wide max is a valid, overflow-safe
    # stabilizer (softmax is shift-invariant within each (batch, head) column), and
    # zero-padded batch rows give logits exactly 0 (no NaN) and are sliced off later.
    m = jnp.max(logits, axis=0, keepdims=True)                            # (1, H)
    e = jnp.exp(logits - m)                                               # (Bt*N, H) EUP
    denom = jnp.dot(Bsel, e, preferred_element_type=f32)                  # (Bt, H) per-batch sums
    inv_rows = jnp.dot(BselT, 1.0 / denom, preferred_element_type=f32)    # (Bt*N, H)
    p = e * inv_rows                                                      # attn_drop(p=0) == id

    # out[b, c] = sum_n p[b, n, head(c)] * v[b, n, c]
    p_full = jnp.dot(p, ST, preferred_element_type=f32)                   # (Bt*N, C)
    pooled = jnp.dot(Bsel, p_full * v, preferred_element_type=f32)        # (Bt, C)

    # proj = Conv3d(C, C, 1) on a (B, C, 1, 1, 1) tensor == dense matmul over C.
    out_ref[...] = (jnp.dot(pooled, wp_ref[...], preferred_element_type=f32)
                    + bp_ref[...])
    # proj_drop(p=0.0) == identity


def c_cross_attention3d_pallas(x, y, wq, bq, wkv, bkv, wproj, bproj,
                               num_heads, batch_tile=None):
    """x: (B, C, D, H, W), y: (B, C, 1, 1, 1).  Returns (B, C, 1, 1, 1) fp32."""
    x = jnp.asarray(x, jnp.float32)
    y = jnp.asarray(y, jnp.float32)
    B, C, D, Hs, Ws = x.shape
    N = D * Hs * Ws
    By, Cy, Dy, Hy, Wy = y.shape
    Ny = Dy * Hy * Wy
    assert By == B and Cy == C
    assert Ny == 1, "forward's reshape(B, C, 1, 1, 1) requires a single query position"
    H = num_heads
    assert C % H == 0
    dh = C // H

    # Parameter layouts.
    wq_t = jnp.asarray(wq, jnp.float32).reshape(C, C).T                # (C, C)   x @ W^T
    bq_r = jnp.asarray(bq, jnp.float32).reshape(1, C)
    wkv_m = jnp.asarray(wkv, jnp.float32).reshape(2 * C, C)            # (2C, C)  W @ x_cf
    bkv_c = jnp.asarray(bkv, jnp.float32).reshape(2 * C, 1)
    wp_t = jnp.asarray(wproj, jnp.float32).reshape(C, C).T             # (C, C)
    bp_r = jnp.asarray(bproj, jnp.float32).reshape(1, C)

    # Batch tiling: single grid step for small batches (amortizes per-step overhead on
    # single-TC v5e/v6e); >= 2 "parallel" steps for larger batches so v7x's two
    # TensorCores both get work.  Multi-step tiles must be 8-sublane aligned.
    if batch_tile is None:
        batch_tile = B if B <= 8 else 8 * ((B + 15) // 16)
    if batch_tile >= B:
        Bt = B
    else:
        Bt = max(8, (int(batch_tile) // 8) * 8)
    Bp = Bt * ((B + Bt - 1) // Bt)
    grid = (Bp // Bt,)

    # Head selector and batch selector (tiny constant 0/1 matrices).
    S = (jnp.arange(C)[:, None] // dh == jnp.arange(H)[None, :]).astype(jnp.float32)
    ST = S.T                                                           # (H, C)
    Bsel = (jnp.arange(Bt)[:, None] == (jnp.arange(Bt * N)[None, :] // N)
            ).astype(jnp.float32)                                      # (Bt, Bt*N)
    BselT = Bsel.T                                                     # (Bt*N, Bt)

    # Channels-first inputs straight from the PyTorch layout (no wrapper transposes).
    x_cn = x.reshape(B, C, N)
    y_c = y.reshape(B, C)
    if Bp != B:
        # Zero padding is benign: padded k rows give logits exactly 0 (no NaN) and the
        # padded outputs are sliced off below.  Keep this invariant if refactoring.
        x_cn = jnp.pad(x_cn, ((0, Bp - B), (0, 0), (0, 0)))
        y_c = jnp.pad(y_c, ((0, Bp - B), (0, 0)))

    # ---- kernel 1: kv projection, channels-first output ----
    kernel1 = functools.partial(_kv_proj_cf_kernel, batch_tile=Bt)
    kv_cf = pl.pallas_call(
        kernel1,
        out_shape=jax.ShapeDtypeStruct((Bp, 2 * C, N), jnp.float32),
        grid_spec=pltpu.PrefetchScalarGridSpec(
            num_scalar_prefetch=0,
            grid=grid,
            in_specs=[
                pl.BlockSpec((Bt, C, N), lambda b: (b, 0, 0)),         # x (channels-first)
                pl.BlockSpec((2 * C, C), lambda b: (0, 0)),            # wkv
                pl.BlockSpec((2 * C, 1), lambda b: (0, 0)),            # bkv
            ],
            out_specs=pl.BlockSpec((Bt, 2 * C, N), lambda b: (b, 0, 0)),
        ),
        compiler_params=pltpu.CompilerParams(
            dimension_semantics=("parallel",)),
    )(x_cn, wkv_m, bkv_c)

    # Faithful PyTorch scramble: the contiguous channels-first (2C, N) buffer per batch
    # is reinterpreted as (N, 2C).  Row-major reshape -> free (no transpose, no copy).
    kv_flat = kv_cf.reshape(Bp * N, 2 * C)

    # ---- kernel 2: q conv + normalize + softmax attention + proj (vectorized) ----
    out2 = pl.pallas_call(
        _cross_attn_kernel,
        out_shape=jax.ShapeDtypeStruct((Bp, C), jnp.float32),
        grid_spec=pltpu.PrefetchScalarGridSpec(
            num_scalar_prefetch=0,
            grid=grid,
            in_specs=[
                pl.BlockSpec((Bt, C), lambda b: (b, 0)),               # y
                pl.BlockSpec((Bt * N, 2 * C), lambda b: (b, 0)),       # scrambled kv
                pl.BlockSpec((C, C), lambda b: (0, 0)),                # wq^T
                pl.BlockSpec((1, C), lambda b: (0, 0)),                # bq
                pl.BlockSpec((C, H), lambda b: (0, 0)),                # S
                pl.BlockSpec((H, C), lambda b: (0, 0)),                # S^T
                pl.BlockSpec((Bt, Bt * N), lambda b: (0, 0)),          # Bsel
                pl.BlockSpec((Bt * N, Bt), lambda b: (0, 0)),          # Bsel^T
                pl.BlockSpec((C, C), lambda b: (0, 0)),                # wproj^T
                pl.BlockSpec((1, C), lambda b: (0, 0)),                # bproj
            ],
            out_specs=pl.BlockSpec((Bt, C), lambda b: (b, 0)),
        ),
        compiler_params=pltpu.CompilerParams(
            dimension_semantics=("parallel",)),
    )(y_c, kv_flat, wq_t, bq_r, S, ST, Bsel, BselT, wp_t, bp_r)

    return out2[:B].reshape(B, C, 1, 1, 1)


def c_cross_attention3d_ref(x, y, wq, bq, wkv, bkv, wproj, bproj, num_heads):
    """Pure-JAX reference mirroring the PyTorch forward exactly (fp32)."""
    B, C, D, Hs, Ws = x.shape
    N = D * Hs * Ws
    _, Cy, Dy, Hy, Wy = y.shape
    Ny = Dy * Hy * Wy
    H = num_heads
    dh = Cy // H
    hp = jax.lax.Precision.HIGHEST
    q = jnp.einsum('oc,bcn->bon', wq.reshape(Cy, Cy), y.reshape(B, Cy, Ny),
                   precision=hp) + bq[None, :, None]                   # (B, C, Ny)
    kv = jnp.einsum('oc,bcn->bon', wkv.reshape(2 * C, C), x.reshape(B, C, N),
                    precision=hp) + bkv[None, :, None]                 # (B, 2C, N)
    q = q.reshape(B, Ny, H, dh).transpose(0, 2, 1, 3)                  # (B, H, Ny, d)
    kv = kv.reshape(B, N, 2, H, dh).transpose(2, 0, 3, 1, 4)           # (2, B, H, N, d)
    k, v = kv[0], kv[1]
    qn = q / jnp.maximum(jnp.linalg.norm(q, axis=-1, keepdims=True), 1e-12)
    kn = k / jnp.maximum(jnp.linalg.norm(k, axis=-1, keepdims=True), 1e-12)
    attn = jnp.einsum('bhqd,bhkd->bhqk', qn, kn, precision=hp)
    attn = jax.nn.softmax(attn, axis=-1)
    o = jnp.einsum('bhqk,bhkd->bhqd', attn, v, precision=hp)           # (B, H, Ny, d)
    o = o.transpose(0, 2, 1, 3).reshape(B, C, 1, 1, 1)
    out = jnp.einsum('oc,bcxyz->boxyz', wproj.reshape(C, C), o,
                     precision=hp) + bproj[None, :, None, None, None]
    return out


if __name__ == "__main__":
    # Small but lane-friendly shapes: dim C = 128, num_heads = 8 (d = 16),
    # x spatial (3, 4, 4) -> N = 48 tokens, y spatial (1, 1, 1), batch 16.
    B, C, num_heads = 16, 128, 8
    D, Hs, Ws = 3, 4, 4

    key = jax.random.PRNGKey(0)
    kx, ky, kwq, kbq, kwkv, kbkv, kwp, kbp = jax.random.split(key, 8)

    x = jax.random.normal(kx, (B, C, D, Hs, Ws), dtype=jnp.float32)
    y = jax.random.normal(ky, (B, C, 1, 1, 1), dtype=jnp.float32)

    sc = 1.0 / np.sqrt(C)
    wq = jax.random.normal(kwq, (C, C, 1, 1, 1), dtype=jnp.float32) * sc
    bq = jax.random.normal(kbq, (C,), dtype=jnp.float32) * 0.02
    wkv = jax.random.normal(kwkv, (2 * C, C, 1, 1, 1), dtype=jnp.float32) * sc
    bkv = jax.random.normal(kbkv, (2 * C,), dtype=jnp.float32) * 0.02
    wproj = jax.random.normal(kwp, (C, C, 1, 1, 1), dtype=jnp.float32) * sc
    bproj = jax.random.normal(kbp, (C,), dtype=jnp.float32) * 0.02

    out = c_cross_attention3d_pallas(x, y, wq, bq, wkv, bkv, wproj, bproj, num_heads)
    out = jax.block_until_ready(out)

    ref = c_cross_attention3d_ref(x, y, wq, bq, wkv, bkv, wproj, bproj, num_heads)
    np.testing.assert_allclose(np.asarray(out), np.asarray(ref), rtol=2e-4, atol=2e-4)

    assert out.shape == (B, C, 1, 1, 1)
    print("KERNEL_OK")
</pallas_src>

<mosaic_0001>
module attributes {stable_mosaic.version = 11 : i64} {
  func.func @_kv_proj_cf_kernel(%arg0: i32, %arg1: memref<8x128x48xf32, #tpu.memory_space<vmem>>, %arg2: memref<256x128xf32, #tpu.memory_space<vmem>>, %arg3: memref<256x1xf32, #tpu.memory_space<vmem>>, %arg4: memref<8x256x48xf32, #tpu.memory_space<vmem>>) attributes {dimension_semantics = [#tpu.dimension_semantics<parallel>], iteration_bounds = array<i64: 2>, scalar_prefetch = 0 : i64, scratch_operands = 0 : i64, tpu.core_type = #tpu.core_type<tc>, window_params = [{transform_indices = @transform_0, window_bounds = array<i64: 8, 128, 48>}, {pipeline_mode = #tpu.pipeline_mode<synchronous>, transform_indices = @transform_1, window_bounds = array<i64: 256, 128>}, {pipeline_mode = #tpu.pipeline_mode<synchronous>, transform_indices = @transform_2, window_bounds = array<i64: 256, 1>}, {transform_indices = @transform_3, window_bounds = array<i64: 8, 256, 48>}]} {
    %c0 = arith.constant 0 : index
    %c0_0 = arith.constant 0 : index
    %0 = vector.load %arg2[%c0, %c0_0] : memref<256x128xf32, #tpu.memory_space<vmem>>, vector<256x128xf32>
    %c0_1 = arith.constant 0 : index
    %c0_2 = arith.constant 0 : index
    %1 = vector.load %arg3[%c0_1, %c0_2] : memref<256x1xf32, #tpu.memory_space<vmem>>, vector<256x1xf32>
    %c0_3 = arith.constant 0 : index
    %c0_4 = arith.constant 0 : index
    %c0_5 = arith.constant 0 : index
    %2 = vector.load %arg1[%c0_3, %c0_4, %c0_5] : memref<8x128x48xf32, #tpu.memory_space<vmem>>, vector<1x128x48xf32>
    %3 = vector.shape_cast %2 : vector<1x128x48xf32> to vector<128x48xf32>
    %cst = arith.constant dense<0.000000e+00> : vector<256x48xf32>
    %4 = tpu.matmul %0, %3, %cst {dimension_numbers = #tpu.dot_dimension_numbers<[1], [0], [0], [1], [0, 0, 1, 1], [], []>} : vector<256x128xf32>, vector<128x48xf32>, vector<256x48xf32> -> vector<256x48xf32>
    %5 = vector.broadcast %1 : vector<256x1xf32> to vector<256x48xf32>
    %6 = arith.addf %4, %5 : vector<256x48xf32>
    %c0_6 = arith.constant 0 : index
    %c0_7 = arith.constant 0 : index
    %c0_8 = arith.constant 0 : index
    %7 = vector.load %arg4[%c0_6, %c0_7, %c0_8] : memref<8x256x48xf32, #tpu.memory_space<vmem>>, vector<1x256x48xf32>
    %8 = vector.shape_cast %7 : vector<1x256x48xf32> to vector<256x48xf32>
    %9 = vector.shape_cast %6 : vector<256x48xf32> to vector<1x256x48xf32>
    tpu.vector_store %arg4[%c0_6, %c0_7, %c0_8], %9 {strides = array<i32>} : memref<8x256x48xf32, #tpu.memory_space<vmem>>, vector<1x256x48xf32>,
    %c1 = arith.constant 1 : index
    %c0_9 = arith.constant 0 : index
    %c0_10 = arith.constant 0 : index
    %10 = vector.load %arg1[%c1, %c0_9, %c0_10] : memref<8x128x48xf32, #tpu.memory_space<vmem>>, vector<1x128x48xf32>
    %11 = vector.shape_cast %10 : vector<1x128x48xf32> to vector<128x48xf32>
    %cst_11 = arith.constant dense<0.000000e+00> : vector<256x48xf32>
    %12 = tpu.matmul %0, %11, %cst_11 {dimension_numbers = #tpu.dot_dimension_numbers<[1], [0], [0], [1], [0, 0, 1, 1], [], []>} : vector<256x128xf32>, vector<128x48xf32>, vector<256x48xf32> -> vector<256x48xf32>
    %13 = vector.broadcast %1 : vector<256x1xf32> to vector<256x48xf32>
    %14 = arith.addf %12, %13 : vector<256x48xf32>
    %c1_12 = arith.constant 1 : index
    %c0_13 = arith.constant 0 : index
    %c0_14 = arith.constant 0 : index
    %15 = vector.load %arg4[%c1_12, %c0_13, %c0_14] : memref<8x256x48xf32, #tpu.memory_space<vmem>>, vector<1x256x48xf32>
    %16 = vector.shape_cast %15 : vector<1x256x48xf32> to vector<256x48xf32>
    %17 = vector.shape_cast %14 : vector<256x48xf32> to vector<1x256x48xf32>
    tpu.vector_store %arg4[%c1_12, %c0_13, %c0_14], %17 {strides = array<i32>} : memref<8x256x48xf32, #tpu.memory_space<vmem>>, vector<1x256x48xf32>,
    %c2 = arith.constant 2 : index
    %c0_15 = arith.constant 0 : index
    %c0_16 = arith.constant 0 : index
    %18 = vector.load %arg1[%c2, %c0_15, %c0_16] : memref<8x128x48xf32, #tpu.memory_space<vmem>>, vector<1x128x48xf32>
    %19 = vector.shape_cast %18 : vector<1x128x48xf32> to vector<128x48xf32>
    %cst_17 = arith.constant dense<0.000000e+00> : vector<256x48xf32>
    %20 = tpu.matmul %0, %19, %cst_17 {dimension_numbers = #tpu.dot_dimension_numbers<[1], [0], [0], [1], [0, 0, 1, 1], [], []>} : vector<256x128xf32>, vector<128x48xf32>, vector<256x48xf32> -> vector<256x48xf32>
    %21 = vector.broadcast %1 : vector<256x1xf32> to vector<256x48xf32>
    %22 = arith.addf %20, %21 : vector<256x48xf32>
    %c2_18 = arith.constant 2 : index
    %c0_19 = arith.constant 0 : index
    %c0_20 = arith.constant 0 : index
    %23 = vector.load %arg4[%c2_18, %c0_19, %c0_20] : memref<8x256x48xf32, #tpu.memory_space<vmem>>, vector<1x256x48xf32>
    %24 = vector.shape_cast %23 : vector<1x256x48xf32> to vector<256x48xf32>
    %25 = vector.shape_cast %22 : vector<256x48xf32> to vector<1x256x48xf32>
    tpu.vector_store %arg4[%c2_18, %c0_19, %c0_20], %25 {strides = array<i32>} : memref<8x256x48xf32, #tpu.memory_space<vmem>>, vector<1x256x48xf32>,
    %c3 = arith.constant 3 : index
    %c0_21 = arith.constant 0 : index
    %c0_22 = arith.constant 0 : index
    %26 = vector.load %arg1[%c3, %c0_21, %c0_22] : memref<8x128x48xf32, #tpu.memory_space<vmem>>, vector<1x128x48xf32>
    %27 = vector.shape_cast %26 : vector<1x128x48xf32> to vector<128x48xf32>
    %cst_23 = arith.constant dense<0.000000e+00> : vector<256x48xf32>
    %28 = tpu.matmul %0, %27, %cst_23 {dimension_numbers = #tpu.dot_dimension_numbers<[1], [0], [0], [1], [0, 0, 1, 1], [], []>} : vector<256x128xf32>, vector<128x48xf32>, vector<256x48xf32> -> vector<256x48xf32>
    %29 = vector.broadcast %1 : vector<256x1xf32> to vector<256x48xf32>
    %30 = arith.addf %28, %29 : vector<256x48xf32>
    %c3_24 = arith.constant 3 : index
    %c0_25 = arith.constant 0 : index
    %c0_26 = arith.constant 0 : index
    %31 = vector.load %arg4[%c3_24, %c0_25, %c0_26] : memref<8x256x48xf32, #tpu.memory_space<vmem>>, vector<1x256x48xf32>
    %32 = vector.shape_cast %31 : vector<1x256x48xf32> to vector<256x48xf32>
    %33 = vector.shape_cast %30 : vector<256x48xf32> to vector<1x256x48xf32>
    tpu.vector_store %arg4[%c3_24, %c0_25, %c0_26], %33 {strides = array<i32>} : memref<8x256x48xf32, #tpu.memory_space<vmem>>, vector<1x256x48xf32>,
    %c4 = arith.constant 4 : index
    %c0_27 = arith.constant 0 : index
    %c0_28 = arith.constant 0 : index
    %34 = vector.load %arg1[%c4, %c0_27, %c0_28] : memref<8x128x48xf32, #tpu.memory_space<vmem>>, vector<1x128x48xf32>
    %35 = vector.shape_cast %34 : vector<1x128x48xf32> to vector<128x48xf32>
    %cst_29 = arith.constant dense<0.000000e+00> : vector<256x48xf32>
    %36 = tpu.matmul %0, %35, %cst_29 {dimension_numbers = #tpu.dot_dimension_numbers<[1], [0], [0], [1], [0, 0, 1, 1], [], []>} : vector<256x128xf32>, vector<128x48xf32>, vector<256x48xf32> -> vector<256x48xf32>
    %37 = vector.broadcast %1 : vector<256x1xf32> to vector<256x48xf32>
    %38 = arith.addf %36, %37 : vector<256x48xf32>
    %c4_30 = arith.constant 4 : index
    %c0_31 = arith.constant 0 : index
    %c0_32 = arith.constant 0 : index
    %39 = vector.load %arg4[%c4_30, %c0_31, %c0_32] : memref<8x256x48xf32, #tpu.memory_space<vmem>>, vector<1x256x48xf32>
    %40 = vector.shape_cast %39 : vector<1x256x48xf32> to vector<256x48xf32>
    %41 = vector.shape_cast %38 : vector<256x48xf32> to vector<1x256x48xf32>
    tpu.vector_store %arg4[%c4_30, %c0_31, %c0_32], %41 {strides = array<i32>} : memref<8x256x48xf32, #tpu.memory_space<vmem>>, vector<1x256x48xf32>,
    %c5 = arith.constant 5 : index
    %c0_33 = arith.constant 0 : index
    %c0_34 = arith.constant 0 : index
    %42 = vector.load %arg1[%c5, %c0_33, %c0_34] : memref<8x128x48xf32, #tpu.memory_space<vmem>>, vector<1x128x48xf32>
    %43 = vector.shape_cast %42 : vector<1x128x48xf32> to vector<128x48xf32>
    %cst_35 = arith.constant dense<0.000000e+00> : vector<256x48xf32>
    %44 = tpu.matmul %0, %43, %cst_35 {dimension_numbers = #tpu.dot_dimension_numbers<[1], [0], [0], [1], [0, 0, 1, 1], [], []>} : vector<256x128xf32>, vector<128x48xf32>, vector<256x48xf32> -> vector<256x48xf32>
    %45 = vector.broadcast %1 : vector<256x1xf32> to vector<256x48xf32>
    %46 = arith.addf %44, %45 : vector<256x48xf32>
    %c5_36 = arith.constant 5 : index
    %c0_37 = arith.constant 0 : index
    %c0_38 = arith.constant 0 : index
    %47 = vector.load %arg4[%c5_36, %c0_37, %c0_38] : memref<8x256x48xf32, #tpu.memory_space<vmem>>, vector<1x256x48xf32>
    %48 = vector.shape_cast %47 : vector<1x256x48xf32> to vector<256x48xf32>
    %49 = vector.shape_cast %46 : vector<256x48xf32> to vector<1x256x48xf32>
    tpu.vector_store %arg4[%c5_36, %c0_37, %c0_38], %49 {strides = array<i32>} : memref<8x256x48xf32, #tpu.memory_space<vmem>>, vector<1x256x48xf32>,
    %c6 = arith.constant 6 : index
    %c0_39 = arith.constant 0 : index
    %c0_40 = arith.constant 0 : index
    %50 = vector.load %arg1[%c6, %c0_39, %c0_40] : memref<8x128x48xf32, #tpu.memory_space<vmem>>, vector<1x128x48xf32>
    %51 = vector.shape_cast %50 : vector<1x128x48xf32> to vector<128x48xf32>
    %cst_41 = arith.constant dense<0.000000e+00> : vector<256x48xf32>
    %52 = tpu.matmul %0, %51, %cst_41 {dimension_numbers = #tpu.dot_dimension_numbers<[1], [0], [0], [1], [0, 0, 1, 1], [], []>} : vector<256x128xf32>, vector<128x48xf32>, vector<256x48xf32> -> vector<256x48xf32>
    %53 = vector.broadcast %1 : vector<256x1xf32> to vector<256x48xf32>
    %54 = arith.addf %52, %53 : vector<256x48xf32>
    %c6_42 = arith.constant 6 : index
    %c0_43 = arith.constant 0 : index
    %c0_44 = arith.constant 0 : index
    %55 = vector.load %arg4[%c6_42, %c0_43, %c0_44] : memref<8x256x48xf32, #tpu.memory_space<vmem>>, vector<1x256x48xf32>
    %56 = vector.shape_cast %55 : vector<1x256x48xf32> to vector<256x48xf32>
    %57 = vector.shape_cast %54 : vector<256x48xf32> to vector<1x256x48xf32>
    tpu.vector_store %arg4[%c6_42, %c0_43, %c0_44], %57 {strides = array<i32>} : memref<8x256x48xf32, #tpu.memory_space<vmem>>, vector<1x256x48xf32>,
    %c7 = arith.constant 7 : index
    %c0_45 = arith.constant 0 : index
    %c0_46 = arith.constant 0 : index
    %58 = vector.load %arg1[%c7, %c0_45, %c0_46] : memref<8x128x48xf32, #tpu.memory_space<vmem>>, vector<1x128x48xf32>
    %59 = vector.shape_cast %58 : vector<1x128x48xf32> to vector<128x48xf32>
    %cst_47 = arith.constant dense<0.000000e+00> : vector<256x48xf32>
    %60 = tpu.matmul %0, %59, %cst_47 {dimension_numbers = #tpu.dot_dimension_numbers<[1], [0], [0], [1], [0, 0, 1, 1], [], []>} : vector<256x128xf32>, vector<128x48xf32>, vector<256x48xf32> -> vector<256x48xf32>
    %61 = vector.broadcast %1 : vector<256x1xf32> to vector<256x48xf32>
    %62 = arith.addf %60, %61 : vector<256x48xf32>
    %c7_48 = arith.constant 7 : index
    %c0_49 = arith.constant 0 : index
    %c0_50 = arith.constant 0 : index
    %63 = vector.load %arg4[%c7_48, %c0_49, %c0_50] : memref<8x256x48xf32, #tpu.memory_space<vmem>>, vector<1x256x48xf32>
    %64 = vector.shape_cast %63 : vector<1x256x48xf32> to vector<256x48xf32>
    %65 = vector.shape_cast %62 : vector<256x48xf32> to vector<1x256x48xf32>
    tpu.vector_store %arg4[%c7_48, %c0_49, %c0_50], %65 {strides = array<i32>} : memref<8x256x48xf32, #tpu.memory_space<vmem>>, vector<1x256x48xf32>,
    return
  }
  func.func @transform_0(%arg0: i32) -> (i32, i32, i32) {
    %c0_i32 = arith.constant 0 : i32
    %c0_i32_0 = arith.constant 0 : i32
    %c0_i32_1 = arith.constant 0 : i32
    return %arg0, %c0_i32, %c0_i32_0 : i32, i32, i32
  }
  func.func @transform_1(%arg0: i32) -> (i32, i32) {
    %c0_i32 = arith.constant 0 : i32
    %c0_i32_0 = arith.constant 0 : i32
    %c0_i32_1 = arith.constant 0 : i32
    return %c0_i32, %c0_i32_0 : i32, i32
  }
  func.func @transform_2(%arg0: i32) -> (i32, i32) {
    %c0_i32 = arith.constant 0 : i32
    %c0_i32_0 = arith.constant 0 : i32
    %c0_i32_1 = arith.constant 0 : i32
    return %c0_i32, %c0_i32_0 : i32, i32
  }
  func.func @transform_3(%arg0: i32) -> (i32, i32, i32) {
    %c0_i32 = arith.constant 0 : i32
    %c0_i32_0 = arith.constant 0 : i32
    %c0_i32_1 = arith.constant 0 : i32
    return %arg0, %c0_i32, %c0_i32_0 : i32, i32, i32
  }
}

</mosaic_0001>

<bundles_post_ra>
// kernel: tpu_custom_call.1
= control target key start
LH: loop header
LB: loop body
LE: loop exit
PB: predicated region body
PF: predicated region fallthrough
CT: control target
= control target key end

     0   :  { %8 = vsyncpa [#allocation3], 0  ;;  %s4182_s12 = smov 0   ;;  %s5540_s0 = inlined_call_operand.vmem [shape: f32[16,128,48], index: 0, kind: input, shape index: {}]   ;;  %s5541_s1 = inlined_call_operand.hbm [shape: f32[256,128], index: 1, kind: input, shape index: {}]   ;;  %s5542_s2 = inlined_call_operand.vmem [shape: f32[256,1], index: 2, kind: input, shape index: {}]   ;;  %s5543_s3 = inlined_call_operand.vmem [shape: f32[16,256,48], index: 3, kind: output, shape index: {}]  }
   0x1 LB: > { %s2687_s13 = sadd.s32 4294967295, %s4156_s12   ;;  %p2689_p0 = scmp.ge.s32.totalorder %s4156_s12, 1  ;;  %s4156_s12 = sphi %s4182_s12, %s14_s12  }
   0x2   : > { %p113_p1 = scmp.lt.s32.totalorder %s4156_s12, 3  ;;  %s4158_s14 = smov [#allocation2]  }
   0x3   : > { %s125_s15 = sshll.u32 %s4158_s14, 4  ;;  %p4194_p3 = scmp.eq.s32.totalorder %s2687_s13, 0  ;;  %s126_s15 = int_to_ptr.vmem [resolvable:$true] %s125_s15 }
   0x4   : > { %p4190_p2 = pnand %p2689_p0, %p113_p1  ;;  %s4131_s18 = scalar_lea.vmem %s126_s15, 4096 }
   0x5   : > { %p4132_p7 = scmp.ne.s32.totalorder %s126_s15, %s4131_s18  ;;  %p4139_p10 = scmp.lt.s32.totalorder %s126_s15, %s126_s15 }
   0x6   : > { %p4068_p4 = pneg %p4190_p2  ;;  %p4140_p11 = scmp.lt.s32.totalorder %s4131_s18, %s4131_s18 }
   0x8   : > { %p4069_p5 = pnand %p4194_p3, %p4068_p4  ;;  %p4141_p12 = por %p4140_p11, %p4139_p10 }
   0xa   : > { %p4122_p6 = pneg %p4069_p5 }
   0xc   : > { %p4134_p8 = pnand %p4132_p7, %p4122_p6 }
   0xe   : > { %p4135_p9 = pneg %p4134_p8 }
  0x10   : > { %p4142_p13 = pnand %p4141_p12, %p4135_p9 }
  0x12   : > { %4145 = shalt.err (!%p4142_p13)
}
  0x13   : > { %s4159_s19 = smov 128   ;;  %s4160_s20 = smov 8  }
  0x14   : > { %4071 = dma.hbm_to_vmem [thread:$0]  (!%p4069_p5), %s5541_s1, 4096, %s126_s15, [#allocation3], %s4159_s19, %s4159_s19, %s4160_s20  }
  0x15   : > { %154 = sbr.rel (%p4190_p2) target bundleno = 533 (0x215), region = 32 }
  0x1a   : > { %4151 = dma.done.wait (%p4194_p3), [#allocation3], 4096  }
  0x1b   : > { %4153 = vsyncadd (%p4194_p3), [#allocation3], 4294963200  ;;  %s2694_s23 = sshll.u32 %s2687_s13, 3  ;;  %v4161_v0 = vmov 0   ;;  %v4251_v33 = vld [vmem:[#allocation2] sm:$0xff]  ;;  %v4253_v34 = vld [vmem:[#allocation2 + $0x8] sm:$0xff] }
  0x1c   : > { %p181_p0 = scmp.lt.s32.totalorder %s2694_s23, 15  ;;  %4086 = vset.pattern.permute.xlu0 %v4161_v0  ;;  %4087 = vset.pattern.permute.xlu1 %v4161_v0  ;;  %v4261_v37 = vld [vmem:[#allocation2 + $0x10] sm:$0xff]  ;;  %v4263_v38 = vld [vmem:[#allocation2 + $0x18] sm:$0xff]  ;;  %v4271_v41 = vld [vmem:[#allocation2 + $0x20] sm:$0xff]  ;;  %vm659_vm0 = vcmask 392192  }
  0x1d   : > { %3456 = vmatprep.mubr.f32.mxu0 %v4251_v33  ;;  %3536 = vmatprep.mubr.f32.mxu1 %v4251_v33  ;;  %v4273_v42 = vld [vmem:[#allocation2 + $0x28] sm:$0xff]  ;;  %v4281_v45 = vld [vmem:[#allocation2 + $0x30] sm:$0xff]  ;;  %v4283_v46 = vld [vmem:[#allocation2 + $0x38] sm:$0xff] }
  0x1e   : > { %s5547_s23 = smov (!%p181_p0, %s2694_s23), 15  ;;  %v4291_v49 = vld [vmem:[#allocation2 + $0x40] sm:$0xff]  ;;  %v4293_v50 = vld [vmem:[#allocation2 + $0x48] sm:$0xff]  ;;  %v4301_v53 = vld [vmem:[#allocation2 + $0x50] sm:$0xff] }
  0x1f   : > { %s3038_s24 = sshll.u32 %s5547_s23, 7  ;;  %v4303_v54 = vld [vmem:[#allocation2 + $0x58] sm:$0xff]  ;;  %v4311_v57 = vld [vmem:[#allocation2 + $0x60] sm:$0xff]  ;;  %v4313_v58 = vld [vmem:[#allocation2 + $0x68] sm:$0xff]  ;;  %s3039_s18 = sshll.u32 %s5547_s23, 8 }
  0x20   : > { %s4217_s27 = scalar_lea.vmem %s5540_s0, %s3038_s24  ;;  %v4321_v61 = vld [vmem:[#allocation2 + $0x70] sm:$0xff]  ;;  %v4323_v62 = vld [vmem:[#allocation2 + $0x78] sm:$0xff]  ;;  %s4691_s21 = scalar_lea.vmem %s5543_s3, %s3039_s18 }
  0x21   : > { %v273_v1 = vld [vmem:[%s4217_s27 + $0x78] sm:$0xff]  ;;  %v272_v3 = vld [vmem:[%s4217_s27 + $0x70] sm:$0xff]  ;;  %v271_v5 = vld [vmem:[%s4217_s27 + $0x68] sm:$0xff] }
  0x22   : > { %v2715_v2 = vld [vmem:[%s4217_s27 + $0xf8] sm:$0xff]  ;;  %3424 = vmatprep.subr.mxu0 %v273_v1  ;;  %v2714_v4 = vld [vmem:[%s4217_s27 + $0xf0] sm:$0xff]  ;;  %v2713_v6 = vld [vmem:[%s4217_s27 + $0xe8] sm:$0xff] }
  0x23   : > { %3504 = vmatprep.subr.mxu1 %v2715_v2  ;;  %3425 = vmatpush3.msra.mxu0 %v273_v1  ;;  %v270_v7 = vld [vmem:[%s4217_s27 + $0x60] sm:$0xff]  ;;  %v269_v9 = vld [vmem:[%s4217_s27 + $0x58] sm:$0xff]  ;;  %v268_v11 = vld [vmem:[%s4217_s27 + $0x50] sm:$0xff] }
  0x24   : > { %3505 = vmatpush3.msra.mxu1 %v2715_v2  ;;  %3426 = vmatprep.subr.mxu0 %v272_v3  ;;  %v2712_v8 = vld [vmem:[%s4217_s27 + $0xe0] sm:$0xff]  ;;  %v2711_v10 = vld [vmem:[%s4217_s27 + $0xd8] sm:$0xff]  ;;  %v2710_v12 = vld [vmem:[%s4217_s27 + $0xd0] sm:$0xff] }
  0x25   : > { %3506 = vmatprep.subr.mxu1 %v2714_v4  ;;  %3427 = vmatpush3.msra.mxu0 %v272_v3  ;;  %v267_v13 = vld [vmem:[%s4217_s27 + $0x48] sm:$0xff]  ;;  %v266_v15 = vld [vmem:[%s4217_s27 + $0x40] sm:$0xff]  ;;  %v265_v17 = vld [vmem:[%s4217_s27 + $0x38] sm:$0xff] }
  0x26   : > { %3507 = vmatpush3.msra.mxu1 %v2714_v4  ;;  %3428 = vmatprep.subr.mxu0 %v271_v5  ;;  %v2709_v14 = vld [vmem:[%s4217_s27 + $0xc8] sm:$0xff]  ;;  %v2708_v16 = vld [vmem:[%s4217_s27 + $0xc0] sm:$0xff]  ;;  %v2707_v18 = vld [vmem:[%s4217_s27 + $0xb8] sm:$0xff] }
  0x27   : > { %3508 = vmatprep.subr.mxu1 %v2713_v6  ;;  %3429 = vmatpush3.msra.mxu0 %v271_v5  ;;  %v264_v19 = vld [vmem:[%s4217_s27 + $0x30] sm:$0xff]  ;;  %v263_v21 = vld [vmem:[%s4217_s27 + $0x28] sm:$0xff]  ;;  %v262_v23 = vld [vmem:[%s4217_s27 + $0x20] sm:$0xff] }
  0x28   : > { %3509 = vmatpush3.msra.mxu1 %v2713_v6  ;;  %3430 = vmatprep.subr.mxu0 %v270_v7  ;;  %v2706_v20 = vld [vmem:[%s4217_s27 + $0xb0] sm:$0xff]  ;;  %v2705_v22 = vld [vmem:[%s4217_s27 + $0xa8] sm:$0xff]  ;;  %v2704_v24 = vld [vmem:[%s4217_s27 + $0xa0] sm:$0xff] }
  0x29   : > { %3510 = vmatprep.subr.mxu1 %v2712_v8  ;;  %3431 = vmatpush3.msra.mxu0 %v270_v7  ;;  %v261_v25 = vld [vmem:[%s4217_s27 + $0x18] sm:$0xff]  ;;  %v260_v27 = vld [vmem:[%s4217_s27 + $0x10] sm:$0xff]  ;;  %v259_v29 = vld [vmem:[%s4217_s27 + $0x8] sm:$0xff] }
  0x2a   : > { %3511 = vmatpush3.msra.mxu1 %v2712_v8  ;;  %3432 = vmatprep.subr.mxu0 %v269_v9  ;;  %v2703_v26 = vld [vmem:[%s4217_s27 + $0x98] sm:$0xff]  ;;  %v2702_v28 = vld [vmem:[%s4217_s27 + $0x90] sm:$0xff]  ;;  %v2701_v30 = vld [vmem:[%s4217_s27 + $0x88] sm:$0xff] }
  0x2b   : > { %3512 = vmatprep.subr.mxu1 %v2711_v10  ;;  %3433 = vmatpush3.msra.mxu0 %v269_v9  ;;  %v258_v31 = vld [vmem:[%s4217_s27] sm:$0xff]  ;;  %v2763_v35 = vld [vmem:[%s4217_s27 + $0x178] sm:$0xff]  ;;  %v2762_v39 = vld [vmem:[%s4217_s27 + $0x170] sm:$0xff] }
  0x2c   : > { %3513 = vmatpush3.msra.mxu1 %v2711_v10  ;;  %3434 = vmatprep.subr.mxu0 %v268_v11  ;;  %v2700_v32 = vld [vmem:[%s4217_s27 + $0x80] sm:$0xff]  ;;  %v2811_v36 = vld [vmem:[%s4217_s27 + $0x1f8] sm:$0xff]  ;;  %v2810_v40 = vld [vmem:[%s4217_s27 + $0x1f0] sm:$0xff] }
  0x2d   : > { %3514 = vmatprep.subr.mxu1 %v2710_v12  ;;  %3435 = vmatpush3.msra.mxu0 %v268_v11  ;;  %v2761_v43 = vld [vmem:[%s4217_s27 + $0x168] sm:$0xff]  ;;  %v2760_v47 = vld [vmem:[%s4217_s27 + $0x160] sm:$0xff]  ;;  %v2759_v51 = vld [vmem:[%s4217_s27 + $0x158] sm:$0xff] }
  0x2e   : > { %3515 = vmatpush3.msra.mxu1 %v2710_v12  ;;  %3436 = vmatprep.subr.mxu0 %v267_v13  ;;  %v2809_v44 = vld [vmem:[%s4217_s27 + $0x1e8] sm:$0xff]  ;;  %v2808_v48 = vld [vmem:[%s4217_s27 + $0x1e0] sm:$0xff]  ;;  %v2807_v52 = vld [vmem:[%s4217_s27 + $0x1d8] sm:$0xff] }
  0x2f   : > { %3516 = vmatprep.subr.mxu1 %v2709_v14  ;;  %3437 = vmatpush3.msra.mxu0 %v267_v13  ;;  %v2758_v55 = vld [vmem:[%s4217_s27 + $0x150] sm:$0xff]  ;;  %v2757_v59 = vld [vmem:[%s4217_s27 + $0x148] sm:$0xff]  ;;  %v2756_v63 = vld [vmem:[%s4217_s27 + $0x140] sm:$0xff] }
  0x30   : > { %3517 = vmatpush3.msra.mxu1 %v2709_v14  ;;  %3438 = vmatprep.subr.mxu0 %v266_v15  ;;  %v2806_v56 = vld [vmem:[%s4217_s27 + $0x1d0] sm:$0xff]  ;;  %v2805_v60 = vld [vmem:[%s4217_s27 + $0x1c8] sm:$0xff]  ;;  %v2804_v0 = vld [vmem:[%s4217_s27 + $0x1c0] sm:$0xff] }
  0x31   : > { %3518 = vmatprep.subr.mxu1 %v2708_v16  ;;  %3439 = vmatpush3.msra.mxu0 %v266_v15  ;;  %v4331_v1 = vld [vmem:[#allocation2 + $0x80] sm:$0xff]  ;;  %v4333_v2 = vld [vmem:[#allocation2 + $0x88] sm:$0xff]  ;;  %v2755_v3 = vld [vmem:[%s4217_s27 + $0x138] sm:$0xff] }
  0x32   : > { %3519 = vmatpush3.msra.mxu1 %v2708_v16  ;;  %3440 = vmatprep.subr.mxu0 %v265_v17  ;;  %v2803_v4 = vld [vmem:[%s4217_s27 + $0x1b8] sm:$0xff]  ;;  %v4341_v5 = vld [vmem:[#allocation2 + $0x90] sm:$0xff]  ;;  %v4351_v9 = vld [vmem:[#allocation2 + $0xa0] sm:$0xff] }
  0x33   : > { %3520 = vmatprep.subr.mxu1 %v2707_v18  ;;  %3441 = vmatpush3.msra.mxu0 %v265_v17  ;;  %v4343_v6 = vld [vmem:[#allocation2 + $0x98] sm:$0xff]  ;;  %v2754_v7 = vld [vmem:[%s4217_s27 + $0x130] sm:$0xff]  ;;  %v4353_v10 = vld [vmem:[#allocation2 + $0xa8] sm:$0xff] }
  0x34   : > { %3521 = vmatpush3.msra.mxu1 %v2707_v18  ;;  %3442 = vmatprep.subr.mxu0 %v264_v19  ;;  %v2802_v8 = vld [vmem:[%s4217_s27 + $0x1b0] sm:$0xff]  ;;  %v2753_v11 = vld [vmem:[%s4217_s27 + $0x128] sm:$0xff]  ;;  %v4363_v14 = vld [vmem:[#allocation2 + $0xb8] sm:$0xff] }
  0x35   : > { %3522 = vmatprep.subr.mxu1 %v2706_v20  ;;  %3443 = vmatpush3.msra.mxu0 %v264_v19  ;;  %v2801_v12 = vld [vmem:[%s4217_s27 + $0x1a8] sm:$0xff]  ;;  %v4361_v13 = vld [vmem:[#allocation2 + $0xb0] sm:$0xff]  ;;  %v2752_v15 = vld [vmem:[%s4217_s27 + $0x120] sm:$0xff] }
  0x36   : > { %3523 = vmatpush3.msra.mxu1 %v2706_v20  ;;  %3444 = vmatprep.subr.mxu0 %v263_v21  ;;  %v2800_v16 = vld [vmem:[%s4217_s27 + $0x1a0] sm:$0xff]  ;;  %v4373_v18 = vld [vmem:[#allocation2 + $0xc8] sm:$0xff]  ;;  %v2751_v19 = vld [vmem:[%s4217_s27 + $0x118] sm:$0xff] }
  0x37   : > { %3524 = vmatprep.subr.mxu1 %v2705_v22  ;;  %3445 = vmatpush3.msra.mxu0 %v263_v21  ;;  %v4371_v17 = vld [vmem:[#allocation2 + $0xc0] sm:$0xff]  ;;  %v2799_v20 = vld [vmem:[%s4217_s27 + $0x198] sm:$0xff]  ;;  %v4381_v21 = vld [vmem:[#allocation2 + $0xd0] sm:$0xff] }
  0x38   : > { %3525 = vmatpush3.msra.mxu1 %v2705_v22  ;;  %3446 = vmatprep.subr.mxu0 %v262_v23  ;;  %v4383_v22 = vld [vmem:[#allocation2 + $0xd8] sm:$0xff] }
  0x39   : > { %3526 = vmatprep.subr.mxu1 %v2704_v24  ;;  %3447 = vmatpush3.msra.mxu0 %v262_v23  ;;  %v2750_v23 = vld [vmem:[%s4217_s27 + $0x110] sm:$0xff] }
  0x3a   : > { %3527 = vmatpush3.msra.mxu1 %v2704_v24  ;;  %3448 = vmatprep.subr.mxu0 %v261_v25  ;;  %v2798_v24 = vld [vmem:[%s4217_s27 + $0x190] sm:$0xff] }
  0x3b   : > { %3528 = vmatprep.subr.mxu1 %v2703_v26  ;;  %3449 = vmatpush3.msra.mxu0 %v261_v25  ;;  %v4391_v25 = vld [vmem:[#allocation2 + $0xe0] sm:$0xff] }
  0x3c   : > { %3529 = vmatpush3.msra.mxu1 %v2703_v26  ;;  %3450 = vmatprep.subr.mxu0 %v260_v27  ;;  %v4393_v26 = vld [vmem:[#allocation2 + $0xe8] sm:$0xff] }
  0x3d   : > { %3530 = vmatprep.subr.mxu1 %v2702_v28  ;;  %3451 = vmatpush3.msra.mxu0 %v260_v27  ;;  %v2749_v27 = vld [vmem:[%s4217_s27 + $0x108] sm:$0xff] }
  0x3e   : > { %3531 = vmatpush3.msra.mxu1 %v2702_v28  ;;  %3452 = vmatprep.subr.mxu0 %v259_v29  ;;  %v2797_v28 = vld [vmem:[%s4217_s27 + $0x188] sm:$0xff] }
  0x3f   : > { %3532 = vmatprep.subr.mxu1 %v2701_v30  ;;  %3453 = vmatpush3.msra.mxu0 %v259_v29  ;;  %v4401_v29 = vld [vmem:[#allocation2 + $0xf0] sm:$0xff] }
  0x40   : > { %3533 = vmatpush3.msra.mxu1 %v2701_v30  ;;  %3454 = vmatprep.subr.mxu0 %v258_v31  ;;  %v4403_v30 = vld [vmem:[#allocation2 + $0xf8] sm:$0xff] }
  0x41   : > { %3534 = vmatprep.subr.mxu1 %v2700_v32  ;;  %3455 = vmatpush3.msra.mxu0 %v258_v31  ;;  %v2748_v31 = vld [vmem:[%s4217_s27 + $0x100] sm:$0xff] }
  0x42   : > { %3535 = vmatpush3.msra.mxu1 %v2700_v32  ;;  %3457 = vmatmul.mubr.f32.vlgmr.msra.gmra.mxu0 %v4253_v34  ;;  %v2796_v32 = vld [vmem:[%s4217_s27 + $0x180] sm:$0xff] }
  0x43   : > { %3537 = vmatmul.mubr.f32.vlgmr.msra.gmra.mxu1 %v4253_v34  ;;  %3584 = vmatprep.subr.mxu0 %v2763_v35 }
  0x44   : > { %3664 = vmatprep.subr.mxu1 %v2811_v36  ;;  %3585 = vmatpush3.msra.mxu0 %v2763_v35  ;;  %v2859_v35 = vld [vmem:[%s4217_s27 + $0x278] sm:$0xff] }
  0x45   : > { %3665 = vmatpush3.msra.mxu1 %v2811_v36  ;;  %3459 = vmatprep.mubr.f32.mxu0 %v4261_v37  ;;  %v2907_v36 = vld [vmem:[%s4217_s27 + $0x2f8] sm:$0xff] }
  0x46   : > { %3539 = vmatprep.mubr.f32.mxu1 %v4261_v37  ;;  %3460 = vmatmul.mubr.f32.gmra.mxu0 %v4263_v38 }
  0x47   : > { %3540 = vmatmul.mubr.f32.gmra.mxu1 %v4263_v38  ;;  %3586 = vmatprep.subr.mxu0 %v2762_v39 }
  0x48   : > { %3666 = vmatprep.subr.mxu1 %v2810_v40  ;;  %3587 = vmatpush3.msra.mxu0 %v2762_v39  ;;  %v226_v39 = vld [vmem:[%s5542_s2] sm:$0xff] }
  0x49   : > { %3667 = vmatpush3.msra.mxu1 %v2810_v40  ;;  %3462 = vmatprep.mubr.f32.mxu0 %v4271_v41  ;;  %v2858_v40 = vld [vmem:[%s4217_s27 + $0x270] sm:$0xff] }
  0x4a   : > { %3542 = vmatprep.mubr.f32.mxu1 %v4271_v41  ;;  %3463 = vmatmul.mubr.f32.gmra.mxu0 %v4273_v42 }
  0x4b   : > { %3543 = vmatmul.mubr.f32.gmra.mxu1 %v4273_v42  ;;  %3588 = vmatprep.subr.mxu0 %v2761_v43 }
  0x4c   : > { %3668 = vmatprep.subr.mxu1 %v2809_v44  ;;  %3589 = vmatpush3.msra.mxu0 %v2761_v43  ;;  %v2906_v43 = vld [vmem:[%s4217_s27 + $0x2f0] sm:$0xff] }
  0x4d   : > { %3669 = vmatpush3.msra.mxu1 %v2809_v44  ;;  %3465 = vmatprep.mubr.f32.mxu0 %v4281_v45  ;;  %v228_v44 = vld [vmem:[%s5542_s2 + $0x10] sm:$0xff] }
  0x4e   : > { %3545 = vmatprep.mubr.f32.mxu1 %v4281_v45  ;;  %3466 = vmatmul.mubr.f32.gmra.mxu0 %v4283_v46 }
  0x4f   : > { %3546 = vmatmul.mubr.f32.gmra.mxu1 %v4283_v46  ;;  %3590 = vmatprep.subr.mxu0 %v2760_v47 }
  0x50   : > { %3670 = vmatprep.subr.mxu1 %v2808_v48  ;;  %3591 = vmatpush3.msra.mxu0 %v2760_v47  ;;  %v227_v47 = vld [vmem:[%s5542_s2 + $0x8] sm:$0xff] }
  0x51   : > { %3671 = vmatpush3.msra.mxu1 %v2808_v48  ;;  %3468 = vmatprep.mubr.f32.mxu0 %v4291_v49  ;;  %v2857_v48 = vld [vmem:[%s4217_s27 + $0x268] sm:$0xff] }
  0x52   : > { %3548 = vmatprep.mubr.f32.mxu1 %v4291_v49  ;;  %3469 = vmatmul.mubr.f32.gmra.mxu0 %v4293_v50 }
  0x53   : > { %3549 = vmatmul.mubr.f32.gmra.mxu1 %v4293_v50  ;;  %3592 = vmatprep.subr.mxu0 %v2759_v51 }
  0x54   : > { %3672 = vmatprep.subr.mxu1 %v2807_v52  ;;  %3593 = vmatpush3.msra.mxu0 %v2759_v51  ;;  %v2905_v51 = vld [vmem:[%s4217_s27 + $0x2e8] sm:$0xff] }
  0x55   : > { %3673 = vmatpush3.msra.mxu1 %v2807_v52  ;;  %3471 = vmatprep.mubr.f32.mxu0 %v4301_v53  ;;  %v229_v52 = vld [vmem:[%s5542_s2 + $0x18] sm:$0xff] }
  0x56   : > { %3551 = vmatprep.mubr.f32.mxu1 %v4301_v53  ;;  %3472 = vmatmul.mubr.f32.gmra.mxu0 %v4303_v54 }
  0x57   : > { %3552 = vmatmul.mubr.f32.gmra.mxu1 %v4303_v54  ;;  %3594 = vmatprep.subr.mxu0 %v2758_v55 }
  0x58   : > { %3674 = vmatprep.subr.mxu1 %v2806_v56  ;;  %3595 = vmatpush3.msra.mxu0 %v2758_v55  ;;  %v2856_v55 = vld [vmem:[%s4217_s27 + $0x260] sm:$0xff] }
  0x59   : > { %3675 = vmatpush3.msra.mxu1 %v2806_v56  ;;  %3474 = vmatprep.mubr.f32.mxu0 %v4311_v57  ;;  %v2904_v56 = vld [vmem:[%s4217_s27 + $0x2e0] sm:$0xff] }
  0x5a   : > { %3554 = vmatprep.mubr.f32.mxu1 %v4311_v57  ;;  %3475 = vmatmul.mubr.f32.gmra.mxu0 %v4313_v58 }
  0x5b   : > { %3555 = vmatmul.mubr.f32.gmra.mxu1 %v4313_v58  ;;  %3596 = vmatprep.subr.mxu0 %v2757_v59 }
  0x5c   : > { %3676 = vmatprep.subr.mxu1 %v2805_v60  ;;  %3597 = vmatpush3.msra.mxu0 %v2757_v59  ;;  %v231_v59 = vld [vmem:[%s5542_s2 + $0x28] sm:$0xff] }
  0x5d   : > { %3677 = vmatpush3.msra.mxu1 %v2805_v60  ;;  %3477 = vmatprep.mubr.f32.mxu0 %v4321_v61  ;;  %v230_v60 = vld [vmem:[%s5542_s2 + $0x20] sm:$0xff] }
  0x5e   : > { %3557 = vmatprep.mubr.f32.mxu1 %v4321_v61  ;;  %3478 = vmatmul.mubr.f32.gmra.mxu0 %v4323_v62 }
  0x5f   : > { %3558 = vmatmul.mubr.f32.gmra.mxu1 %v4323_v62  ;;  %3598 = vmatprep.subr.mxu0 %v2756_v63 }
  0x60   : > { %3678 = vmatprep.subr.mxu1 %v2804_v0  ;;  %3599 = vmatpush3.msra.mxu0 %v2756_v63  ;;  %v2855_v63 = vld [vmem:[%s4217_s27 + $0x258] sm:$0xff] }
  0x61   : > { %3679 = vmatpush3.msra.mxu1 %v2804_v0  ;;  %3480 = vmatprep.mubr.f32.mxu0 %v4331_v1  ;;  %v2903_v0 = vld [vmem:[%s4217_s27 + $0x2d8] sm:$0xff] }
  0x62   : > { %3560 = vmatprep.mubr.f32.mxu1 %v4331_v1  ;;  %3481 = vmatmul.mubr.f32.gmra.mxu0 %v4333_v2 }
  0x63   : > { %3561 = vmatmul.mubr.f32.gmra.mxu1 %v4333_v2  ;;  %3600 = vmatprep.subr.mxu0 %v2755_v3 }
  0x64   : > { %3680 = vmatprep.subr.mxu1 %v2803_v4  ;;  %3601 = vmatpush3.msra.mxu0 %v2755_v3  ;;  %v233_v3 = vld [vmem:[%s5542_s2 + $0x38] sm:$0xff] }
  0x65   : > { %3681 = vmatpush3.msra.mxu1 %v2803_v4  ;;  %3483 = vmatprep.mubr.f32.mxu0 %v4341_v5  ;;  %v232_v4 = vld [vmem:[%s5542_s2 + $0x30] sm:$0xff] }
  0x66   : > { %3563 = vmatprep.mubr.f32.mxu1 %v4341_v5  ;;  %3484 = vmatmul.mubr.f32.gmra.mxu0 %v4343_v6 }
  0x67   : > { %3564 = vmatmul.mubr.f32.gmra.mxu1 %v4343_v6  ;;  %3602 = vmatprep.subr.mxu0 %v2754_v7 }
  0x68   : > { %3682 = vmatprep.subr.mxu1 %v2802_v8  ;;  %3603 = vmatpush3.msra.mxu0 %v2754_v7  ;;  %v2854_v7 = vld [vmem:[%s4217_s27 + $0x250] sm:$0xff] }
  0x69   : > { %3683 = vmatpush3.msra.mxu1 %v2802_v8  ;;  %3486 = vmatprep.mubr.f32.mxu0 %v4351_v9  ;;  %v2902_v8 = vld [vmem:[%s4217_s27 + $0x2d0] sm:$0xff] }
  0x6a   : > { %3566 = vmatprep.mubr.f32.mxu1 %v4351_v9  ;;  %3487 = vmatmul.mubr.f32.gmra.mxu0 %v4353_v10 }
  0x6b   : > { %3567 = vmatmul.mubr.f32.gmra.mxu1 %v4353_v10  ;;  %3604 = vmatprep.subr.mxu0 %v2753_v11 }
  0x6c   : > { %3684 = vmatprep.subr.mxu1 %v2801_v12  ;;  %3605 = vmatpush3.msra.mxu0 %v2753_v11  ;;  %v235_v11 = vld [vmem:[%s5542_s2 + $0x48] sm:$0xff] }
  0x6d   : > { %3685 = vmatpush3.msra.mxu1 %v2801_v12  ;;  %3489 = vmatprep.mubr.f32.mxu0 %v4361_v13  ;;  %v234_v12 = vld [vmem:[%s5542_s2 + $0x40] sm:$0xff] }
  0x6e   : > { %3569 = vmatprep.mubr.f32.mxu1 %v4361_v13  ;;  %3490 = vmatmul.mubr.f32.gmra.mxu0 %v4363_v14 }
  0x6f   : > { %3570 = vmatmul.mubr.f32.gmra.mxu1 %v4363_v14  ;;  %3606 = vmatprep.subr.mxu0 %v2752_v15 }
  0x70   : > { %3686 = vmatprep.subr.mxu1 %v2800_v16  ;;  %3607 = vmatpush3.msra.mxu0 %v2752_v15  ;;  %v2853_v15 = vld [vmem:[%s4217_s27 + $0x248] sm:$0xff] }
  0x71   : > { %3687 = vmatpush3.msra.mxu1 %v2800_v16  ;;  %3492 = vmatprep.mubr.f32.mxu0 %v4371_v17  ;;  %v2901_v16 = vld [vmem:[%s4217_s27 + $0x2c8] sm:$0xff] }
  0x72   : > { %3572 = vmatprep.mubr.f32.mxu1 %v4371_v17  ;;  %3493 = vmatmul.mubr.f32.gmra.mxu0 %v4373_v18 }
  0x73   : > { %3573 = vmatmul.mubr.f32.gmra.mxu1 %v4373_v18  ;;  %3608 = vmatprep.subr.mxu0 %v2751_v19 }
  0x74   : > { %3688 = vmatprep.subr.mxu1 %v2799_v20  ;;  %3609 = vmatpush3.msra.mxu0 %v2751_v19  ;;  %v237_v19 = vld [vmem:[%s5542_s2 + $0x58] sm:$0xff] }
  0x75   : > { %3689 = vmatpush3.msra.mxu1 %v2799_v20  ;;  %3495 = vmatprep.mubr.f32.mxu0 %v4381_v21  ;;  %v236_v20 = vld [vmem:[%s5542_s2 + $0x50] sm:$0xff] }
  0x76   : > { %3575 = vmatprep.mubr.f32.mxu1 %v4381_v21  ;;  %3496 = vmatmul.mubr.f32.gmra.mxu0 %v4383_v22 }
  0x77   : > { %3576 = vmatmul.mubr.f32.gmra.mxu1 %v4383_v22  ;;  %3610 = vmatprep.subr.mxu0 %v2750_v23 }
  0x78   : > { %3690 = vmatprep.subr.mxu1 %v2798_v24  ;;  %3611 = vmatpush3.msra.mxu0 %v2750_v23  ;;  %v2852_v23 = vld [vmem:[%s4217_s27 + $0x240] sm:$0xff] }
  0x79   : > { %3691 = vmatpush3.msra.mxu1 %v2798_v24  ;;  %3498 = vmatprep.mubr.f32.mxu0 %v4391_v25  ;;  %v2900_v24 = vld [vmem:[%s4217_s27 + $0x2c0] sm:$0xff] }
  0x7a   : > { %3578 = vmatprep.mubr.f32.mxu1 %v4391_v25  ;;  %3499 = vmatmul.mubr.f32.gmra.mxu0 %v4393_v26 }
  0x7b   : > { %3579 = vmatmul.mubr.f32.gmra.mxu1 %v4393_v26  ;;  %3612 = vmatprep.subr.mxu0 %v2749_v27 }
  0x7c   : > { %3692 = vmatprep.subr.mxu1 %v2797_v28  ;;  %3613 = vmatpush3.msra.mxu0 %v2749_v27  ;;  %v239_v27 = vld [vmem:[%s5542_s2 + $0x68] sm:$0xff] }
  0x7d   : > { %3693 = vmatpush3.msra.mxu1 %v2797_v28  ;;  %3501 = vmatprep.mubr.f32.mxu0 %v4401_v29  ;;  %v238_v28 = vld [vmem:[%s5542_s2 + $0x60] sm:$0xff] }
  0x7e   : > { %3581 = vmatprep.mubr.f32.mxu1 %v4401_v29  ;;  %3502 = vmatmul.mubr.f32.gmra.mxu0 %v4403_v30 }
  0x7f   : > { %3582 = vmatmul.mubr.f32.gmra.mxu1 %v4403_v30  ;;  %3614 = vmatprep.subr.mxu0 %v2748_v31 }
  0x80   : > { %3694 = vmatprep.subr.mxu1 %v2796_v32  ;;  %3615 = vmatpush3.msra.mxu0 %v2748_v31  ;;  %v2851_v31 = vld [vmem:[%s4217_s27 + $0x238] sm:$0xff] }
  0x81   : > { %3695 = vmatpush3.msra.mxu1 %v2796_v32  ;;  %3616 = vmatprep.mubr.f32.mxu0 %v4251_v33  ;;  %v2899_v32 = vld [vmem:[%s4217_s27 + $0x2b8] sm:$0xff] }
  0x82   : > { %3696 = vmatprep.mubr.f32.mxu1 %v4251_v33  ;;  %3617 = vmatmul.mubr.f32.vlgmr.msra.gmra.mxu0 %v4253_v34 }
  0x83   : > { %3697 = vmatmul.mubr.f32.vlgmr.msra.gmra.mxu1 %v4253_v34  ;;  %3744 = vmatprep.subr.mxu0 %v2859_v35 }
  0x84   : > { %3824 = vmatprep.subr.mxu1 %v2907_v36  ;;  %3745 = vmatpush3.msra.mxu0 %v2859_v35  ;;  %v241_v35 = vld [vmem:[%s5542_s2 + $0x78] sm:$0xff] }
  0x85   : > { %3825 = vmatpush3.msra.mxu1 %v2907_v36  ;;  %276 = vperm.xlu0 %4086, %v226_v39   ;;  %v240_v36 = vld [vmem:[%s5542_s2 + $0x70] sm:$0xff] }
  0x86   : > { %3619 = vmatprep.mubr.f32.mxu0 %v4261_v37  ;;  %3699 = vmatprep.mubr.f32.mxu1 %v4261_v37  ;;  %v2850_v39 = vld [vmem:[%s4217_s27 + $0x230] sm:$0xff] }
  0x87   : > { %3620 = vmatmul.mubr.f32.gmra.mxu0 %v4263_v38  ;;  %3700 = vmatmul.mubr.f32.gmra.mxu1 %v4263_v38 }
  0x88   : > { %3746 = vmatprep.subr.mxu0 %v2858_v40  ;;  %3826 = vmatprep.subr.mxu1 %v2906_v43 }
  0x89   : > { %3747 = vmatpush3.msra.mxu0 %v2858_v40  ;;  %3827 = vmatpush3.msra.mxu1 %v2906_v43  ;;  %v2898_v40 = vld [vmem:[%s4217_s27 + $0x2b0] sm:$0xff]  ;;  %v243_v43 = vld [vmem:[%s5542_s2 + $0x88] sm:$0xff] }
  0x8a   : > { %286 = vperm.xlu1 %4087, %v228_v44   ;;  %281 = vperm.xlu0 %4086, %v227_v47   ;;  %v242_v44 = vld [vmem:[%s5542_s2 + $0x80] sm:$0xff]  ;;  %v2849_v47 = vld [vmem:[%s4217_s27 + $0x228] sm:$0xff] }
  0x8b   : > { %3622 = vmatprep.mubr.f32.mxu0 %v4271_v41  ;;  %3702 = vmatprep.mubr.f32.mxu1 %v4271_v41 }
  0x8c   : > { %3623 = vmatmul.mubr.f32.gmra.mxu0 %v4273_v42  ;;  %3703 = vmatmul.mubr.f32.gmra.mxu1 %v4273_v42 }
  0x8d   : > { %3748 = vmatprep.subr.mxu0 %v2857_v48  ;;  %3828 = vmatprep.subr.mxu1 %v2905_v51 }
  0x8e   : > { %3749 = vmatpush3.msra.mxu0 %v2857_v48  ;;  %3829 = vmatpush3.msra.mxu1 %v2905_v51  ;;  %v2897_v48 = vld [vmem:[%s4217_s27 + $0x2a8] sm:$0xff]  ;;  %v245_v51 = vld [vmem:[%s5542_s2 + $0x98] sm:$0xff] }
  0x8f   : > { %291 = vperm.xlu1 %4087, %v229_v52   ;;  %3625 = vmatprep.mubr.f32.mxu0 %v4281_v45  ;;  %v244_v52 = vld [vmem:[%s5542_s2 + $0x90] sm:$0xff] }
  0x90   : > { %3705 = vmatprep.mubr.f32.mxu1 %v4281_v45  ;;  %3626 = vmatmul.mubr.f32.gmra.mxu0 %v4283_v46 }
  0x91   : > { %3706 = vmatmul.mubr.f32.gmra.mxu1 %v4283_v46  ;;  %3750 = vmatprep.subr.mxu0 %v2856_v55 }
  0x92   : > { %3830 = vmatprep.subr.mxu1 %v2904_v56  ;;  %3751 = vmatpush3.msra.mxu0 %v2856_v55  ;;  %v2848_v55 = vld [vmem:[%s4217_s27 + $0x220] sm:$0xff] }
  0x93   : > { %3831 = vmatpush3.msra.mxu1 %v2904_v56  ;;  %301 = vperm.xlu1 %4087, %v231_v59   ;;  %v2896_v56 = vld [vmem:[%s4217_s27 + $0x2a0] sm:$0xff]  ;;  %v247_v59 = vld [vmem:[%s5542_s2 + $0xa8] sm:$0xff] }
  0x94   : > { %296 = vperm.xlu0 %4086, %v230_v60   ;;  %3628 = vmatprep.mubr.f32.mxu0 %v4291_v49  ;;  %v246_v60 = vld [vmem:[%s5542_s2 + $0xa0] sm:$0xff] }
  0x95   : > { %3708 = vmatprep.mubr.f32.mxu1 %v4291_v49  ;;  %3629 = vmatmul.mubr.f32.gmra.mxu0 %v4293_v50 }
  0x96   : > { %3709 = vmatmul.mubr.f32.gmra.mxu1 %v4293_v50  ;;  %3752 = vmatprep.subr.mxu0 %v2855_v63 }
  0x97   : > { %3832 = vmatprep.subr.mxu1 %v2903_v0  ;;  %3753 = vmatpush3.msra.mxu0 %v2855_v63  ;;  %v2847_v63 = vld [vmem:[%s4217_s27 + $0x218] sm:$0xff] }
  0x98   : > { %3833 = vmatpush3.msra.mxu1 %v2903_v0  ;;  %311 = vperm.xlu1 %4087, %v233_v3   ;;  %v2895_v0 = vld [vmem:[%s4217_s27 + $0x298] sm:$0xff] }
  0x99   : > { %306 = vperm.xlu0 %4086, %v232_v4   ;;  %3631 = vmatprep.mubr.f32.mxu0 %v4301_v53  ;;  %v249_v3 = vld [vmem:[%s5542_s2 + $0xb8] sm:$0xff]  ;;  %v248_v4 = vld [vmem:[%s5542_s2 + $0xb0] sm:$0xff] }
  0x9a   : > { %3711 = vmatprep.mubr.f32.mxu1 %v4301_v53  ;;  %3632 = vmatmul.mubr.f32.gmra.mxu0 %v4303_v54 }
  0x9b   : > { %3712 = vmatmul.mubr.f32.gmra.mxu1 %v4303_v54  ;;  %3754 = vmatprep.subr.mxu0 %v2854_v7 }
  0x9c   : > { %3834 = vmatprep.subr.mxu1 %v2902_v8  ;;  %3755 = vmatpush3.msra.mxu0 %v2854_v7  ;;  %v2846_v7 = vld [vmem:[%s4217_s27 + $0x210] sm:$0xff] }
  0x9d   : > { %3835 = vmatpush3.msra.mxu1 %v2902_v8  ;;  %321 = vperm.xlu1 %4087, %v235_v11   ;;  %v2894_v8 = vld [vmem:[%s4217_s27 + $0x290] sm:$0xff]  ;;  %v251_v11 = vld [vmem:[%s5542_s2 + $0xc8] sm:$0xff] }
  0x9e   : > { %316 = vperm.xlu0 %4086, %v234_v12   ;;  %3634 = vmatprep.mubr.f32.mxu0 %v4311_v57  ;;  %v250_v12 = vld [vmem:[%s5542_s2 + $0xc0] sm:$0xff] }
  0x9f   : > { %3714 = vmatprep.mubr.f32.mxu1 %v4311_v57  ;;  %3635 = vmatmul.mubr.f32.gmra.mxu0 %v4313_v58 }
  0xa0   : > { %3715 = vmatmul.mubr.f32.gmra.mxu1 %v4313_v58  ;;  %3756 = vmatprep.subr.mxu0 %v2853_v15 }
  0xa1   : > { %3836 = vmatprep.subr.mxu1 %v2901_v16  ;;  %3757 = vmatpush3.msra.mxu0 %v2853_v15  ;;  %v2845_v15 = vld [vmem:[%s4217_s27 + $0x208] sm:$0xff] }
  0xa2   : > { %3837 = vmatpush3.msra.mxu1 %v2901_v16  ;;  %331 = vperm.xlu1 %4087, %v237_v19   ;;  %v2893_v16 = vld [vmem:[%s4217_s27 + $0x288] sm:$0xff]  ;;  %v253_v19 = vld [vmem:[%s5542_s2 + $0xd8] sm:$0xff] }
  0xa3   : > { %326 = vperm.xlu0 %4086, %v236_v20   ;;  %3637 = vmatprep.mubr.f32.mxu0 %v4321_v61  ;;  %v252_v20 = vld [vmem:[%s5542_s2 + $0xd0] sm:$0xff] }
  0xa4   : > { %3717 = vmatprep.mubr.f32.mxu1 %v4321_v61  ;;  %3638 = vmatmul.mubr.f32.gmra.mxu0 %v4323_v62 }
  0xa5   : > { %3718 = vmatmul.mubr.f32.gmra.mxu1 %v4323_v62  ;;  %3758 = vmatprep.subr.mxu0 %v2852_v23 }
  0xa6   : > { %3838 = vmatprep.subr.mxu1 %v2900_v24  ;;  %3759 = vmatpush3.msra.mxu0 %v2852_v23  ;;  %v2844_v23 = vld [vmem:[%s4217_s27 + $0x200] sm:$0xff] }
  0xa7   : > { %3839 = vmatpush3.msra.mxu1 %v2900_v24  ;;  %341 = vperm.xlu1 %4087, %v239_v27   ;;  %v2892_v24 = vld [vmem:[%s4217_s27 + $0x280] sm:$0xff]  ;;  %v255_v27 = vld [vmem:[%s5542_s2 + $0xe8] sm:$0xff] }
  0xa8   : > { %336 = vperm.xlu0 %4086, %v238_v28   ;;  %3640 = vmatprep.mubr.f32.mxu0 %v4331_v1  ;;  %v254_v28 = vld [vmem:[%s5542_s2 + $0xe0] sm:$0xff] }
  0xa9   : > { %3720 = vmatprep.mubr.f32.mxu1 %v4331_v1  ;;  %3641 = vmatmul.mubr.f32.gmra.mxu0 %v4333_v2 }
  0xaa   : > { %3721 = vmatmul.mubr.f32.gmra.mxu1 %v4333_v2  ;;  %3760 = vmatprep.subr.mxu0 %v2851_v31 }
  0xab   : > { %3840 = vmatprep.subr.mxu1 %v2899_v32  ;;  %3761 = vmatpush3.msra.mxu0 %v2851_v31  ;;  %v2955_v31 = vld [vmem:[%s4217_s27 + $0x378] sm:$0xff] }
  0xac   : > { %3841 = vmatpush3.msra.mxu1 %v2899_v32  ;;  %351 = vperm.xlu1 %4087, %v241_v35   ;;  %v3003_v32 = vld [vmem:[%s4217_s27 + $0x3f8] sm:$0xff] }
  0xad   : > { %346 = vperm.xlu0 %4086, %v240_v36   ;;  %3643 = vmatprep.mubr.f32.mxu0 %v4341_v5  ;;  %v257_v35 = vld [vmem:[%s5542_s2 + $0xf8] sm:$0xff]  ;;  %v256_v36 = vld [vmem:[%s5542_s2 + $0xf0] sm:$0xff] }
  0xae   : > { %3723 = vmatprep.mubr.f32.mxu1 %v4341_v5  ;;  %3644 = vmatmul.mubr.f32.gmra.mxu0 %v4343_v6 }
  0xaf   : > { %3724 = vmatmul.mubr.f32.gmra.mxu1 %v4343_v6  ;;  %3762 = vmatprep.subr.mxu0 %v2850_v39 }
  0xb0   : > { %3842 = vmatprep.subr.mxu1 %v2898_v40  ;;  %3763 = vmatpush3.msra.mxu0 %v2850_v39  ;;  %v3002_v39 = vld [vmem:[%s4217_s27 + $0x3f0] sm:$0xff] }
  0xb1   : > { %3843 = vmatpush3.msra.mxu1 %v2898_v40  ;;  %361 = vperm.xlu1 %4087, %v243_v43   ;;  %v3001_v40 = vld [vmem:[%s4217_s27 + $0x3e8] sm:$0xff] }
  0xb2   : > { %356 = vperm.xlu0 %4086, %v242_v44   ;;  %3646 = vmatprep.mubr.f32.mxu0 %v4351_v9  ;;  %v2942_v44 = vld [vmem:[%s4217_s27 + $0x310] sm:$0xff] }
  0xb3   : > { %3726 = vmatprep.mubr.f32.mxu1 %v4351_v9  ;;  %3647 = vmatmul.mubr.f32.gmra.mxu0 %v4353_v10 }
  0xb4   : > { %3727 = vmatmul.mubr.f32.gmra.mxu1 %v4353_v10  ;;  %3764 = vmatprep.subr.mxu0 %v2849_v47 }
  0xb5   : > { %3844 = vmatprep.subr.mxu1 %v2897_v48  ;;  %3765 = vmatpush3.msra.mxu0 %v2849_v47  ;;  %v2990_v47 = vld [vmem:[%s4217_s27 + $0x390] sm:$0xff] }
  0xb6   : > { %3845 = vmatpush3.msra.mxu1 %v2897_v48  ;;  %371 = vperm.xlu1 %4087, %v245_v51  }
  0xb7   : > { %366 = vperm.xlu0 %4086, %v244_v52   ;;  %3649 = vmatprep.mubr.f32.mxu0 %v4361_v13 }
  0xb8   : > { %3729 = vmatprep.mubr.f32.mxu1 %v4361_v13  ;;  %3650 = vmatmul.mubr.f32.gmra.mxu0 %v4363_v14 }
  0xb9   : > { %3730 = vmatmul.mubr.f32.gmra.mxu1 %v4363_v14  ;;  %3766 = vmatprep.subr.mxu0 %v2848_v55 }
  0xba   : > { %3846 = vmatprep.subr.mxu1 %v2896_v56  ;;  %3767 = vmatpush3.msra.mxu0 %v2848_v55 }
  0xbb   : > { %3847 = vmatpush3.msra.mxu1 %v2896_v56  ;;  %381 = vperm.xlu1 %4087, %v247_v59  }
  0xbc   : > { %376 = vperm.xlu0 %4086, %v246_v60   ;;  %3652 = vmatprep.mubr.f32.mxu0 %v4371_v17 }
  0xbd   : > { %3732 = vmatprep.mubr.f32.mxu1 %v4371_v17  ;;  %3653 = vmatmul.mubr.f32.gmra.mxu0 %v4373_v18 }
  0xbe   : > { %3733 = vmatmul.mubr.f32.gmra.mxu1 %v4373_v18  ;;  %3768 = vmatprep.subr.mxu0 %v2847_v63 }
  0xbf   : > { %3848 = vmatprep.subr.mxu1 %v2895_v0  ;;  %3769 = vmatpush3.msra.mxu0 %v2847_v63  ;;  %v2941_v63 = vld [vmem:[%s4217_s27 + $0x308] sm:$0xff] }
  0xc0   : > { %3849 = vmatpush3.msra.mxu1 %v2895_v0  ;;  %391 = vperm.xlu1 %4087, %v249_v3   ;;  %v2989_v0 = vld [vmem:[%s4217_s27 + $0x388] sm:$0xff] }
  0xc1   : > { %386 = vperm.xlu0 %4086, %v248_v4   ;;  %3655 = vmatprep.mubr.f32.mxu0 %v4381_v21 }
  0xc2   : > { %3735 = vmatprep.mubr.f32.mxu1 %v4381_v21  ;;  %3656 = vmatmul.mubr.f32.gmra.mxu0 %v4383_v22 }
  0xc3   : > { %3736 = vmatmul.mubr.f32.gmra.mxu1 %v4383_v22  ;;  %3770 = vmatprep.subr.mxu0 %v2846_v7 }
  0xc4   : > { %3850 = vmatprep.subr.mxu1 %v2894_v8  ;;  %3771 = vmatpush3.msra.mxu0 %v2846_v7 }
  0xc5   : > { %3851 = vmatpush3.msra.mxu1 %v2894_v8  ;;  %401 = vperm.xlu1 %4087, %v251_v11  }
  0xc6   : > { %396 = vperm.xlu0 %4086, %v250_v12   ;;  %3658 = vmatprep.mubr.f32.mxu0 %v4391_v25 }
  0xc7   : > { %3738 = vmatprep.mubr.f32.mxu1 %v4391_v25  ;;  %3659 = vmatmul.mubr.f32.gmra.mxu0 %v4393_v26 }
  0xc8   : > { %3739 = vmatmul.mubr.f32.gmra.mxu1 %v4393_v26  ;;  %3772 = vmatprep.subr.mxu0 %v2845_v15 }
  0xc9   : > { %3852 = vmatprep.subr.mxu1 %v2893_v16  ;;  %3773 = vmatpush3.msra.mxu0 %v2845_v15 }
  0xca   : > { %3853 = vmatpush3.msra.mxu1 %v2893_v16  ;;  %411 = vperm.xlu1 %4087, %v253_v19   ;;  %v2940_v16 = vld [vmem:[%s4217_s27 + $0x300] sm:$0xff] }
  0xcb   : > { %406 = vperm.xlu0 %4086, %v252_v20   ;;  %3661 = vmatprep.mubr.f32.mxu0 %v4401_v29  ;;  %v2988_v19 = vld [vmem:[%s4217_s27 + $0x380] sm:$0xff] }
  0xcc   : > { %3741 = vmatprep.mubr.f32.mxu1 %v4401_v29  ;;  %3662 = vmatmul.mubr.f32.gmra.mxu0 %v4403_v30 }
  0xcd   : > { %3742 = vmatmul.mubr.f32.gmra.mxu1 %v4403_v30  ;;  %3774 = vmatprep.subr.mxu0 %v2844_v23 }
  0xce   : > { %3854 = vmatprep.subr.mxu1 %v2892_v24  ;;  %3775 = vmatpush3.msra.mxu0 %v2844_v23 }
  0xcf   : > { %3855 = vmatpush3.msra.mxu1 %v2892_v24  ;;  %421 = vperm.xlu1 %4087, %v255_v27  }
  0xd0   : > { %416 = vperm.xlu0 %4086, %v254_v28   ;;  %3776 = vmatprep.mubr.f32.mxu0 %v4251_v33 }
  0xd1   : > { %3856 = vmatprep.mubr.f32.mxu1 %v4251_v33  ;;  %3777 = vmatmul.mubr.f32.vlgmr.msra.gmra.mxu0 %v4253_v34  ;;  %v2954_v33 = vld [vmem:[%s4217_s27 + $0x370] sm:$0xff] }
  0xd2   : > { %3857 = vmatmul.mubr.f32.vlgmr.msra.gmra.mxu1 %v4253_v34  ;;  %3904 = vmatprep.subr.mxu0 %v2955_v31  ;;  %v2953_v34 = vld [vmem:[%s4217_s27 + $0x368] sm:$0xff] }
  0xd3   : > { %3984 = vmatprep.subr.mxu1 %v3003_v32  ;;  %3905 = vmatpush3.msra.mxu0 %v2955_v31 }
  0xd4   : > { %3985 = vmatpush3.msra.mxu1 %v3003_v32  ;;  %431 = vperm.xlu1 %4087, %v257_v35   ;;  %v4088_v35 = vld [vmem:[#allocation2] sm:$0xff] }
  0xd5   : > { %426 = vperm.xlu0 %4086, %v256_v36   ;;  %3779 = vmatprep.mubr.f32.mxu0 %v4261_v37 }
  0xd6   : > { %3859 = vmatprep.mubr.f32.mxu1 %v4261_v37  ;;  %3780 = vmatmul.mubr.f32.gmra.mxu0 %v4263_v38  ;;  %v2952_v37 = vld [vmem:[%s4217_s27 + $0x360] sm:$0xff] }
  0xd7   : > { %3860 = vmatmul.mubr.f32.gmra.mxu1 %v4263_v38  ;;  %3906 = vmatprep.subr.mxu0 %v2954_v33  ;;  %v3000_v38 = vld [vmem:[%s4217_s27 + $0x3e0] sm:$0xff] }
  0xd8   : > { %3986 = vmatprep.subr.mxu1 %v3002_v39  ;;  %3907 = vmatpush3.msra.mxu0 %v2954_v33 }
  0xd9   : > { %3987 = vmatpush3.msra.mxu1 %v3002_v39  ;;  %3782 = vmatprep.mubr.f32.mxu0 %v4271_v41  ;;  %v4089_v39 = vld [vmem:[#allocation2 + $0x8] sm:$0xff] }
  0xda   : > { %3862 = vmatprep.mubr.f32.mxu1 %v4271_v41  ;;  %3783 = vmatmul.mubr.f32.gmra.mxu0 %v4273_v42  ;;  %v2951_v41 = vld [vmem:[%s4217_s27 + $0x358] sm:$0xff] }
  0xdb   : > { %3863 = vmatmul.mubr.f32.gmra.mxu1 %v4273_v42  ;;  %3908 = vmatprep.subr.mxu0 %v2953_v34  ;;  %v2999_v42 = vld [vmem:[%s4217_s27 + $0x3d8] sm:$0xff] }
  0xdc   : > { %3988 = vmatprep.subr.mxu1 %v3001_v40  ;;  %3909 = vmatpush3.msra.mxu0 %v2953_v34  ;;  %v4090_v34 = vld [vmem:[#allocation2 + $0x10] sm:$0xff] }
  0xdd   : > { %3989 = vmatpush3.msra.mxu1 %v3001_v40  ;;  %3785 = vmatprep.mubr.f32.mxu0 %v4281_v45 }
  0xde   : > { %3865 = vmatprep.mubr.f32.mxu1 %v4281_v45  ;;  %3786 = vmatmul.mubr.f32.gmra.mxu0 %v4283_v46  ;;  %v2950_v45 = vld [vmem:[%s4217_s27 + $0x350] sm:$0xff] }
  0xdf   : > { %3866 = vmatmul.mubr.f32.gmra.mxu1 %v4283_v46  ;;  %3910 = vmatprep.subr.mxu0 %v2952_v37  ;;  %v2998_v46 = vld [vmem:[%s4217_s27 + $0x3d0] sm:$0xff] }
  0xe0   : > { %3990 = vmatprep.subr.mxu1 %v3000_v38  ;;  %3911 = vmatpush3.msra.mxu0 %v2952_v37 }
  0xe1   : > { %3991 = vmatpush3.msra.mxu1 %v3000_v38  ;;  %3788 = vmatprep.mubr.f32.mxu0 %v4291_v49 }
  0xe2   : > { %3868 = vmatprep.mubr.f32.mxu1 %v4291_v49  ;;  %3789 = vmatmul.mubr.f32.gmra.mxu0 %v4293_v50  ;;  %v2949_v49 = vld [vmem:[%s4217_s27 + $0x348] sm:$0xff] }
  0xe3   : > { %3869 = vmatmul.mubr.f32.gmra.mxu1 %v4293_v50  ;;  %3912 = vmatprep.subr.mxu0 %v2951_v41  ;;  %v2997_v50 = vld [vmem:[%s4217_s27 + $0x3c8] sm:$0xff] }
  0xe4   : > { %3992 = vmatprep.subr.mxu1 %v2999_v42  ;;  %3913 = vmatpush3.msra.mxu0 %v2951_v41 }
  0xe5   : > { %3993 = vmatpush3.msra.mxu1 %v2999_v42  ;;  %3791 = vmatprep.mubr.f32.mxu0 %v4301_v53 }
  0xe6   : > { %3871 = vmatprep.mubr.f32.mxu1 %v4301_v53  ;;  %3792 = vmatmul.mubr.f32.gmra.mxu0 %v4303_v54  ;;  %v2948_v53 = vld [vmem:[%s4217_s27 + $0x340] sm:$0xff] }
  0xe7   : > { %3872 = vmatmul.mubr.f32.gmra.mxu1 %v4303_v54  ;;  %3914 = vmatprep.subr.mxu0 %v2950_v45  ;;  %v2996_v54 = vld [vmem:[%s4217_s27 + $0x3c0] sm:$0xff] }
  0xe8   : > { %3994 = vmatprep.subr.mxu1 %v2998_v46  ;;  %3915 = vmatpush3.msra.mxu0 %v2950_v45 }
  0xe9   : > { %3995 = vmatpush3.msra.mxu1 %v2998_v46  ;;  %3794 = vmatprep.mubr.f32.mxu0 %v4311_v57 }
  0xea   : > { %3874 = vmatprep.mubr.f32.mxu1 %v4311_v57  ;;  %3795 = vmatmul.mubr.f32.gmra.mxu0 %v4313_v58  ;;  %v2947_v57 = vld [vmem:[%s4217_s27 + $0x338] sm:$0xff] }
  0xeb   : > { %3875 = vmatmul.mubr.f32.gmra.mxu1 %v4313_v58  ;;  %3916 = vmatprep.subr.mxu0 %v2949_v49  ;;  %v2995_v58 = vld [vmem:[%s4217_s27 + $0x3b8] sm:$0xff] }
  0xec   : > { %3996 = vmatprep.subr.mxu1 %v2997_v50  ;;  %3917 = vmatpush3.msra.mxu0 %v2949_v49 }
  0xed   : > { %3997 = vmatpush3.msra.mxu1 %v2997_v50  ;;  %3797 = vmatprep.mubr.f32.mxu0 %v4321_v61  ;;  %v4091_v50 = vld [vmem:[#allocation2 + $0x18] sm:$0xff] }
  0xee   : > { %3877 = vmatprep.mubr.f32.mxu1 %v4321_v61  ;;  %3798 = vmatmul.mubr.f32.gmra.mxu0 %v4323_v62  ;;  %v2946_v61 = vld [vmem:[%s4217_s27 + $0x330] sm:$0xff] }
  0xef   : > { %3878 = vmatmul.mubr.f32.gmra.mxu1 %v4323_v62  ;;  %3918 = vmatprep.subr.mxu0 %v2948_v53  ;;  %v2994_v62 = vld [vmem:[%s4217_s27 + $0x3b0] sm:$0xff] }
  0xf0   : > { %3998 = vmatprep.subr.mxu1 %v2996_v54  ;;  %3919 = vmatpush3.msra.mxu0 %v2948_v53 }
  0xf1   : > { %3999 = vmatpush3.msra.mxu1 %v2996_v54  ;;  %3800 = vmatprep.mubr.f32.mxu0 %v4331_v1 }
  0xf2   : > { %3880 = vmatprep.mubr.f32.mxu1 %v4331_v1  ;;  %3801 = vmatmul.mubr.f32.gmra.mxu0 %v4333_v2  ;;  %v2945_v1 = vld [vmem:[%s4217_s27 + $0x328] sm:$0xff] }
  0xf3   : > { %3881 = vmatmul.mubr.f32.gmra.mxu1 %v4333_v2  ;;  %3920 = vmatprep.subr.mxu0 %v2947_v57  ;;  %v2993_v2 = vld [vmem:[%s4217_s27 + $0x3a8] sm:$0xff] }
  0xf4   : > { %4000 = vmatprep.subr.mxu1 %v2995_v58  ;;  %3921 = vmatpush3.msra.mxu0 %v2947_v57  ;;  %v4092_v57 = vld [vmem:[#allocation2 + $0x20] sm:$0xff] }
  0xf5   : > { %4001 = vmatpush3.msra.mxu1 %v2995_v58  ;;  %3803 = vmatprep.mubr.f32.mxu0 %v4341_v5 }
  0xf6   : > { %3883 = vmatprep.mubr.f32.mxu1 %v4341_v5  ;;  %3804 = vmatmul.mubr.f32.gmra.mxu0 %v4343_v6  ;;  %v2944_v5 = vld [vmem:[%s4217_s27 + $0x320] sm:$0xff] }
  0xf7   : > { %3884 = vmatmul.mubr.f32.gmra.mxu1 %v4343_v6  ;;  %3922 = vmatprep.subr.mxu0 %v2946_v61  ;;  %v2992_v6 = vld [vmem:[%s4217_s27 + $0x3a0] sm:$0xff] }
  0xf8   : > { %4002 = vmatprep.subr.mxu1 %v2994_v62  ;;  %3923 = vmatpush3.msra.mxu0 %v2946_v61 }
  0xf9   : > { %4003 = vmatpush3.msra.mxu1 %v2994_v62  ;;  %3806 = vmatprep.mubr.f32.mxu0 %v4351_v9 }
  0xfa   : > { %3886 = vmatprep.mubr.f32.mxu1 %v4351_v9  ;;  %3807 = vmatmul.mubr.f32.gmra.mxu0 %v4353_v10  ;;  %v2943_v9 = vld [vmem:[%s4217_s27 + $0x318] sm:$0xff] }
  0xfb   : > { %3887 = vmatmul.mubr.f32.gmra.mxu1 %v4353_v10  ;;  %3924 = vmatprep.subr.mxu0 %v2945_v1  ;;  %v2991_v10 = vld [vmem:[%s4217_s27 + $0x398] sm:$0xff] }
  0xfc   : > { %4004 = vmatprep.subr.mxu1 %v2993_v2  ;;  %3925 = vmatpush3.msra.mxu0 %v2945_v1 }
  0xfd   : > { %4005 = vmatpush3.msra.mxu1 %v2993_v2  ;;  %3809 = vmatprep.mubr.f32.mxu0 %v4361_v13 }
  0xfe   : > { %3889 = vmatprep.mubr.f32.mxu1 %v4361_v13  ;;  %3810 = vmatmul.mubr.f32.gmra.mxu0 %v4363_v14 }
  0xff   : > { %3890 = vmatmul.mubr.f32.gmra.mxu1 %v4363_v14  ;;  %3926 = vmatprep.subr.mxu0 %v2944_v5 }
 0x100   : > { %4006 = vmatprep.subr.mxu1 %v2992_v6  ;;  %3927 = vmatpush3.msra.mxu0 %v2944_v5  ;;  %v4677_v43 = vpop.permute.xlu0 %276 }
 0x101   : > { %4007 = vmatpush3.msra.mxu1 %v2992_v6  ;;  %3812 = vmatprep.mubr.f32.mxu0 %v4371_v17 }
 0x102   : > { %3892 = vmatprep.mubr.f32.mxu1 %v4371_v17  ;;  %3813 = vmatmul.mubr.f32.gmra.mxu0 %v4373_v18  ;;  %v3458_v13 = vpop.f32.mrf.mxu0 }
 0x103   : > { %3893 = vmatmul.mubr.f32.gmra.mxu1 %v4373_v18  ;;  %v3538_v14 = vpop.f32.mrf.mxu1  ;;  %3928 = vmatprep.subr.mxu0 %v2943_v9 }
 0x104   : > { %4008 = vmatprep.subr.mxu1 %v2991_v10  ;;  %3929 = vmatpush3.msra.mxu0 %v2943_v9  ;;  %v500_v51 = vpop.f32.mrf.mxu0 }
 0x105   : > { %4009 = vmatpush3.msra.mxu1 %v2991_v10  ;;  %v4686_v48 = vpop.permute.xlu1 %286  ;;  %3815 = vmatprep.mubr.f32.mxu0 %v4381_v21  ;;  %v4695_v17 = vpop.permute.xlu0 %281  ;;  %v501_v18 = vadd.f32 %v500_v51, %v4677_v43  ;;  %v4093_v10 = vld [vmem:[#allocation2 + $0x28] sm:$0xff] }
 0x106   : > { %3895 = vmatprep.mubr.f32.mxu1 %v4381_v21  ;;  %v775_v52 = vpop.f32.mrf.mxu1  ;;  %3816 = vmatmul.mubr.f32.gmra.mxu0 %v4383_v22  ;;  %v506_v55 = vadd.f32 %v3458_v13, %v4695_v17  ;;  %v781_v56 = vadd.f32 %v3538_v14, %v4695_v17  ;;  %v3461_v59 = vpop.f32.mrf.mxu0  ;;  %v4094_v13 = vld [vmem:[#allocation2 + $0x30] sm:$0xff] }
 0x107   : > { %3896 = vmatmul.mubr.f32.gmra.mxu1 %v4383_v22  ;;  %v776_v21 = vadd.f32 %v775_v52, %v4677_v43  ;;  %3930 = vmatprep.subr.mxu0 %v2942_v44  ;;  %660 = vst.msk [vmem:[%s4691_s21] sm:$0xff] %vm659_vm0, %v501_v18  ;;  %v4095_v18 = vld [vmem:[#allocation2 + $0x38] sm:$0xff] }
 0x108   : > { %4010 = vmatprep.subr.mxu1 %v2990_v47  ;;  %v3541_v60 = vpop.f32.mrf.mxu1  ;;  %3931 = vmatpush3.msra.mxu0 %v2942_v44  ;;  %661 = vst.msk [vmem:[%s4691_s21 + $0x8] sm:$0xff] %vm659_vm0, %v506_v55  ;;  %2717 = vst.msk [vmem:[%s4691_s21 + $0x108] sm:$0xff] %vm659_vm0, %v781_v56  ;;  %v510_v22 = vpop.f32.mrf.mxu0 }
 0x109   : > { %4011 = vmatpush3.msra.mxu1 %v2990_v47  ;;  %2716 = vst.msk [vmem:[%s4691_s21 + $0x100] sm:$0xff] %vm659_vm0, %v776_v21  ;;  %3818 = vmatprep.mubr.f32.mxu0 %v4391_v25  ;;  %v511_v4 = vadd.f32 %v510_v22, %v4686_v48 }
 0x10a   : > { %3898 = vmatprep.mubr.f32.mxu1 %v4391_v25  ;;  %v4715_v3 = vpop.permute.xlu1 %291  ;;  %v785_v7 = vpop.f32.mrf.mxu1  ;;  %3819 = vmatmul.mubr.f32.gmra.mxu0 %v4393_v26 }
 0x10b   : > { %3899 = vmatmul.mubr.f32.gmra.mxu1 %v4393_v26  ;;  %v516_v8 = vadd.f32 %v3461_v59, %v4715_v3  ;;  %v791_v11 = vadd.f32 %v3541_v60, %v4715_v3  ;;  %v786_v25 = vadd.f32 %v785_v7, %v4686_v48  ;;  %v3464_v12 = vpop.f32.mrf.mxu0  ;;  %3932 = vmatprep.subr.mxu0 %v2941_v63  ;;  %v4096_v60 = vld [vmem:[#allocation2 + $0x40] sm:$0xff] }
 0x10c   : > { %4012 = vmatprep.subr.mxu1 %v2989_v0  ;;  %662 = vst.msk [vmem:[%s4691_s21 + $0x10] sm:$0xff] %vm659_vm0, %v511_v4  ;;  %v3544_v15 = vpop.f32.mrf.mxu1  ;;  %3933 = vmatpush3.msra.mxu0 %v2941_v63  ;;  %v4097_v4 = vld [vmem:[#allocation2 + $0x48] sm:$0xff] }
 0x10d   : > { %4013 = vmatpush3.msra.mxu1 %v2989_v0  ;;  %663 = vst.msk [vmem:[%s4691_s21 + $0x18] sm:$0xff] %vm659_vm0, %v516_v8  ;;  %2719 = vst.msk [vmem:[%s4691_s21 + $0x118] sm:$0xff] %vm659_vm0, %v791_v11  ;;  %v520_v26 = vpop.f32.mrf.mxu0  ;;  %3821 = vmatprep.mubr.f32.mxu0 %v4401_v29  ;;  %v4098_v11 = vld [vmem:[#allocation2 + $0x50] sm:$0xff] }
 0x10e   : > { %2718 = vst.msk [vmem:[%s4691_s21 + $0x110] sm:$0xff] %vm659_vm0, %v786_v25  ;;  %3901 = vmatprep.mubr.f32.mxu1 %v4401_v29  ;;  %v795_v20 = vpop.f32.mrf.mxu1  ;;  %3822 = vmatmul.mubr.f32.gmra.mxu0 %v4403_v30  ;;  %v4737_v23 = vpop.permute.xlu1 %301 }
 0x10f   : > { %3902 = vmatmul.mubr.f32.gmra.mxu1 %v4403_v30  ;;  %v4739_v24 = vpop.permute.xlu0 %296  ;;  %3934 = vmatprep.subr.mxu0 %v2940_v16  ;;  %v526_v27 = vadd.f32 %v3464_v12, %v4737_v23  ;;  %v801_v28 = vadd.f32 %v3544_v15, %v4737_v23  ;;  %v3467_v31 = vpop.f32.mrf.mxu0 }
 0x110   : > { %4014 = vmatprep.subr.mxu1 %v2988_v19  ;;  %v521_v29 = vadd.f32 %v520_v26, %v4739_v24  ;;  %v3547_v32 = vpop.f32.mrf.mxu1  ;;  %3935 = vmatpush3.msra.mxu0 %v2940_v16  ;;  %v796_v30 = vadd.f32 %v795_v20, %v4739_v24 }
 0x111   : > { %4015 = vmatpush3.msra.mxu1 %v2988_v19  ;;  %3936 = vmatprep.mubr.f32.mxu0 %v4088_v35  ;;  %665 = vst.msk [vmem:[%s4691_s21 + $0x28] sm:$0xff] %vm659_vm0, %v526_v27  ;;  %2721 = vst.msk [vmem:[%s4691_s21 + $0x128] sm:$0xff] %vm659_vm0, %v801_v28  ;;  %v530_v36 = vpop.f32.mrf.mxu0  ;;  %v4099_v28 = vld [vmem:[#allocation2 + $0x58] sm:$0xff] }
 0x112   : > { %4016 = vmatprep.mubr.f32.mxu1 %v4088_v35  ;;  %664 = vst.msk [vmem:[%s4691_s21 + $0x20] sm:$0xff] %vm659_vm0, %v521_v29  ;;  %v805_v33 = vpop.f32.mrf.mxu1  ;;  %3937 = vmatmul.mubr.f32.vlgmr.msra.gmra.mxu0 %v4089_v39  ;;  %2720 = vst.msk [vmem:[%s4691_s21 + $0x120] sm:$0xff] %vm659_vm0, %v796_v30  ;;  %v4100_v29 = vld [vmem:[#allocation2 + $0x60] sm:$0xff] }
 0x113   : > { %4017 = vmatmul.mubr.f32.vlgmr.msra.gmra.mxu1 %v4089_v39  ;;  %3939 = vmatprep.mubr.f32.mxu0 %v4090_v34  ;;  %v4753_v40 = vpop.permute.xlu1 %311  ;;  %v3470_v46 = vpop.f32.mrf.mxu0 }
 0x114   : > { %4019 = vmatprep.mubr.f32.mxu1 %v4090_v34  ;;  %v4755_v37 = vpop.permute.xlu0 %306  ;;  %v536_v38 = vadd.f32 %v3467_v31, %v4753_v40  ;;  %v811_v41 = vadd.f32 %v3547_v32, %v4753_v40  ;;  %v3550_v49 = vpop.f32.mrf.mxu1 }
 0x115   : > { %v531_v42 = vadd.f32 %v530_v36, %v4755_v37  ;;  %v806_v45 = vadd.f32 %v805_v33, %v4755_v37  ;;  %v540_v53 = vpop.f32.mrf.mxu0 }
 0x116   : > { %3940 = vmatmul.mubr.f32.gmra.mxu0 %v4091_v50  ;;  %667 = vst.msk [vmem:[%s4691_s21 + $0x38] sm:$0xff] %vm659_vm0, %v536_v38  ;;  %2723 = vst.msk [vmem:[%s4691_s21 + $0x138] sm:$0xff] %vm659_vm0, %v811_v41  ;;  %v815_v54 = vpop.f32.mrf.mxu1  ;;  %v4101_v38 = vld [vmem:[#allocation2 + $0x68] sm:$0xff] }
 0x117   : > { %4020 = vmatmul.mubr.f32.gmra.mxu1 %v4091_v50  ;;  %666 = vst.msk [vmem:[%s4691_s21 + $0x30] sm:$0xff] %vm659_vm0, %v531_v42  ;;  %2722 = vst.msk [vmem:[%s4691_s21 + $0x130] sm:$0xff] %vm659_vm0, %v806_v45  ;;  %3942 = vmatprep.mubr.f32.mxu0 %v4092_v57  ;;  %v3473_v6 = vpop.f32.mrf.mxu0  ;;  %v4102_v45 = vld [vmem:[#allocation2 + $0x70] sm:$0xff] }
 0x118   : > { %4022 = vmatprep.mubr.f32.mxu1 %v4092_v57  ;;  %v4769_v58 = vpop.permute.xlu1 %321  ;;  %v3553_v9 = vpop.f32.mrf.mxu1 }
 0x119   : > { %v4771_v61 = vpop.permute.xlu0 %316  ;;  %v546_v62 = vadd.f32 %v3470_v46, %v4769_v58  ;;  %v821_v1 = vadd.f32 %v3550_v49, %v4769_v58  ;;  %v550_v14 = vpop.f32.mrf.mxu0 }
 0x11a   : > { %v541_v2 = vadd.f32 %v540_v53, %v4771_v61  ;;  %v816_v5 = vadd.f32 %v815_v54, %v4771_v61  ;;  %3943 = vmatmul.mubr.f32.gmra.mxu0 %v4093_v10  ;;  %v825_v44 = vpop.f32.mrf.mxu1 }
 0x11b   : > { %4023 = vmatmul.mubr.f32.gmra.mxu1 %v4093_v10  ;;  %3945 = vmatprep.mubr.f32.mxu0 %v4094_v13  ;;  %669 = vst.msk [vmem:[%s4691_s21 + $0x48] sm:$0xff] %vm659_vm0, %v546_v62  ;;  %2725 = vst.msk [vmem:[%s4691_s21 + $0x148] sm:$0xff] %vm659_vm0, %v821_v1  ;;  %v3476_v21 = vpop.f32.mrf.mxu0 }
 0x11c   : > { %4025 = vmatprep.mubr.f32.mxu1 %v4094_v13  ;;  %668 = vst.msk [vmem:[%s4691_s21 + $0x40] sm:$0xff] %vm659_vm0, %v541_v2  ;;  %2724 = vst.msk [vmem:[%s4691_s21 + $0x140] sm:$0xff] %vm659_vm0, %v816_v5  ;;  %v3556_v59 = vpop.f32.mrf.mxu1  ;;  %v4103_v2 = vld [vmem:[#allocation2 + $0x78] sm:$0xff]  ;;  %v4104_v5 = vld [vmem:[#allocation2 + $0x80] sm:$0xff] }
 0x11d   : > { %v4785_v47 = vpop.permute.xlu1 %331  ;;  %v560_v0 = vpop.f32.mrf.mxu0 }
 0x11e   : > { %v4787_v51 = vpop.permute.xlu0 %326  ;;  %3946 = vmatmul.mubr.f32.gmra.mxu0 %v4095_v18  ;;  %v556_v52 = vadd.f32 %v3473_v6, %v4785_v47  ;;  %v831_v55 = vadd.f32 %v3553_v9, %v4785_v47  ;;  %v835_v22 = vpop.f32.mrf.mxu1 }
 0x11f   : > { %4026 = vmatmul.mubr.f32.gmra.mxu1 %v4095_v18  ;;  %v551_v56 = vadd.f32 %v550_v14, %v4787_v51  ;;  %3948 = vmatprep.mubr.f32.mxu0 %v4096_v60  ;;  %v826_v63 = vadd.f32 %v825_v44, %v4787_v51  ;;  %v3479_v16 = vpop.f32.mrf.mxu0  ;;  %v4105_v14 = vld [vmem:[#allocation2 + $0x88] sm:$0xff] }
 0x120   : > { %4028 = vmatprep.mubr.f32.mxu1 %v4096_v60  ;;  %671 = vst.msk [vmem:[%s4691_s21 + $0x58] sm:$0xff] %vm659_vm0, %v556_v52  ;;  %2727 = vst.msk [vmem:[%s4691_s21 + $0x158] sm:$0xff] %vm659_vm0, %v831_v55  ;;  %v3559_v19 = vpop.f32.mrf.mxu1 }
 0x121   : > { %670 = vst.msk [vmem:[%s4691_s21 + $0x50] sm:$0xff] %vm659_vm0, %v551_v56  ;;  %2726 = vst.msk [vmem:[%s4691_s21 + $0x150] sm:$0xff] %vm659_vm0, %v826_v63  ;;  %v570_v20 = vpop.f32.mrf.mxu0 }
 0x122   : > { %3949 = vmatmul.mubr.f32.gmra.mxu0 %v4097_v4  ;;  %v4801_v7 = vpop.permute.xlu1 %341  ;;  %v845_v27 = vpop.f32.mrf.mxu1 }
 0x123   : > { %4029 = vmatmul.mubr.f32.gmra.mxu1 %v4097_v4  ;;  %v4803_v8 = vpop.permute.xlu0 %336  ;;  %3951 = vmatprep.mubr.f32.mxu0 %v4098_v11  ;;  %v566_v25 = vadd.f32 %v3476_v21, %v4801_v7  ;;  %v841_v12 = vadd.f32 %v3556_v59, %v4801_v7  ;;  %v3482_v39 = vpop.f32.mrf.mxu0  ;;  %v4106_v21 = vld [vmem:[#allocation2 + $0x90] sm:$0xff] }
 0x124   : > { %4031 = vmatprep.mubr.f32.mxu1 %v4098_v11  ;;  %v561_v15 = vadd.f32 %v560_v0, %v4803_v8  ;;  %v836_v26 = vadd.f32 %v835_v22, %v4803_v8  ;;  %v3562_v34 = vpop.f32.mrf.mxu1  ;;  %v4107_v0 = vld [vmem:[#allocation2 + $0x98] sm:$0xff]  ;;  %v4108_v11 = vld [vmem:[#allocation2 + $0xa0] sm:$0xff] }
 0x125   : > { %673 = vst.msk [vmem:[%s4691_s21 + $0x68] sm:$0xff] %vm659_vm0, %v566_v25  ;;  %2729 = vst.msk [vmem:[%s4691_s21 + $0x168] sm:$0xff] %vm659_vm0, %v841_v12  ;;  %v580_v41 = vpop.f32.mrf.mxu0 }
 0x126   : > { %672 = vst.msk [vmem:[%s4691_s21 + $0x60] sm:$0xff] %vm659_vm0, %v561_v15  ;;  %3952 = vmatmul.mubr.f32.gmra.mxu0 %v4099_v28  ;;  %2728 = vst.msk [vmem:[%s4691_s21 + $0x160] sm:$0xff] %vm659_vm0, %v836_v26  ;;  %v855_v42 = vpop.f32.mrf.mxu1 }
 0x127   : > { %4032 = vmatmul.mubr.f32.gmra.mxu1 %v4099_v28  ;;  %3954 = vmatprep.mubr.f32.mxu0 %v4100_v29  ;;  %v4817_v31 = vpop.permute.xlu1 %351  ;;  %v3485_v62 = vpop.f32.mrf.mxu0  ;;  %v4109_v28 = vld [vmem:[#allocation2 + $0xa8] sm:$0xff] }
 0x128   : > { %4034 = vmatprep.mubr.f32.mxu1 %v4100_v29  ;;  %v4819_v32 = vpop.permute.xlu0 %346  ;;  %v576_v30 = vadd.f32 %v3479_v16, %v4817_v31  ;;  %v851_v35 = vadd.f32 %v3559_v19, %v4817_v31  ;;  %v3565_v1 = vpop.f32.mrf.mxu1  ;;  %v4110_v29 = vld [vmem:[#allocation2 + $0xb0] sm:$0xff] }
 0x129   : > { %v571_v36 = vadd.f32 %v570_v20, %v4819_v32  ;;  %v846_v33 = vadd.f32 %v845_v27, %v4819_v32  ;;  %v590_v6 = vpop.f32.mrf.mxu0 }
 0x12a   : > { %3955 = vmatmul.mubr.f32.gmra.mxu0 %v4101_v38  ;;  %675 = vst.msk [vmem:[%s4691_s21 + $0x78] sm:$0xff] %vm659_vm0, %v576_v30  ;;  %2731 = vst.msk [vmem:[%s4691_s21 + $0x178] sm:$0xff] %vm659_vm0, %v851_v35  ;;  %v865_v9 = vpop.f32.mrf.mxu1 }
 0x12b   : > { %4035 = vmatmul.mubr.f32.gmra.mxu1 %v4101_v38  ;;  %674 = vst.msk [vmem:[%s4691_s21 + $0x70] sm:$0xff] %vm659_vm0, %v571_v36  ;;  %2730 = vst.msk [vmem:[%s4691_s21 + $0x170] sm:$0xff] %vm659_vm0, %v846_v33  ;;  %3957 = vmatprep.mubr.f32.mxu0 %v4102_v45  ;;  %v3488_v55 = vpop.f32.mrf.mxu0 }
 0x12c   : > { %4037 = vmatprep.mubr.f32.mxu1 %v4102_v45  ;;  %v4833_v46 = vpop.permute.xlu1 %361  ;;  %v3568_v56 = vpop.f32.mrf.mxu1 }
 0x12d   : > { %v4835_v49 = vpop.permute.xlu0 %356  ;;  %v586_v50 = vadd.f32 %v3482_v39, %v4833_v46  ;;  %v861_v53 = vadd.f32 %v3562_v34, %v4833_v46  ;;  %v600_v60 = vpop.f32.mrf.mxu0 }
 0x12e   : > { %v581_v54 = vadd.f32 %v580_v41, %v4835_v49  ;;  %v856_v57 = vadd.f32 %v855_v42, %v4835_v49  ;;  %3958 = vmatmul.mubr.f32.gmra.mxu0 %v4103_v2  ;;  %v875_v63 = vpop.f32.mrf.mxu1  ;;  %v4111_v42 = vld [vmem:[#allocation2 + $0xb8] sm:$0xff] }
 0x12f   : > { %4038 = vmatmul.mubr.f32.gmra.mxu1 %v4103_v2  ;;  %3960 = vmatprep.mubr.f32.mxu0 %v4104_v5  ;;  %677 = vst.msk [vmem:[%s4691_s21 + $0x88] sm:$0xff] %vm659_vm0, %v586_v50  ;;  %2733 = vst.msk [vmem:[%s4691_s21 + $0x188] sm:$0xff] %vm659_vm0, %v861_v53  ;;  %v3491_v16 = vpop.f32.mrf.mxu0  ;;  %v4112_v53 = vld [vmem:[#allocation2 + $0xc0] sm:$0xff] }
 0x130   : > { %4040 = vmatprep.mubr.f32.mxu1 %v4104_v5  ;;  %676 = vst.msk [vmem:[%s4691_s21 + $0x80] sm:$0xff] %vm659_vm0, %v581_v54  ;;  %2732 = vst.msk [vmem:[%s4691_s21 + $0x180] sm:$0xff] %vm659_vm0, %v856_v57  ;;  %v3571_v19 = vpop.f32.mrf.mxu1 }
 0x131   : > { %v4849_v10 = vpop.permute.xlu1 %371  ;;  %v610_v20 = vpop.f32.mrf.mxu0 }
 0x132   : > { %v4851_v13 = vpop.permute.xlu0 %366  ;;  %3961 = vmatmul.mubr.f32.gmra.mxu0 %v4105_v14  ;;  %v596_v44 = vadd.f32 %v3485_v62, %v4849_v10  ;;  %v871_v18 = vadd.f32 %v3565_v1, %v4849_v10  ;;  %v885_v27 = vpop.f32.mrf.mxu1 }
 0x133   : > { %4041 = vmatmul.mubr.f32.gmra.mxu1 %v4105_v14  ;;  %v591_v52 = vadd.f32 %v590_v6, %v4851_v13  ;;  %3963 = vmatprep.mubr.f32.mxu0 %v4106_v21  ;;  %v866_v59 = vadd.f32 %v865_v9, %v4851_v13  ;;  %v3494_v38 = vpop.f32.mrf.mxu0  ;;  %v4113_v14 = vld [vmem:[#allocation2 + $0xc8] sm:$0xff] }
 0x134   : > { %4043 = vmatprep.mubr.f32.mxu1 %v4106_v21  ;;  %679 = vst.msk [vmem:[%s4691_s21 + $0x98] sm:$0xff] %vm659_vm0, %v596_v44  ;;  %2735 = vst.msk [vmem:[%s4691_s21 + $0x198] sm:$0xff] %vm659_vm0, %v871_v18  ;;  %v3574_v41 = vpop.f32.mrf.mxu1  ;;  %v4114_v44 = vld [vmem:[#allocation2 + $0xd0] sm:$0xff]  ;;  %v4115_v21 = vld [vmem:[#allocation2 + $0xd8] sm:$0xff] }
 0x135   : > { %678 = vst.msk [vmem:[%s4691_s21 + $0x90] sm:$0xff] %vm659_vm0, %v591_v52  ;;  %2734 = vst.msk [vmem:[%s4691_s21 + $0x190] sm:$0xff] %vm659_vm0, %v866_v59  ;;  %v620_v45 = vpop.f32.mrf.mxu0 }
 0x136   : > { %3964 = vmatmul.mubr.f32.gmra.mxu0 %v4107_v0  ;;  %v4865_v22 = vpop.permute.xlu1 %381  ;;  %v895_v50 = vpop.f32.mrf.mxu1 }
 0x137   : > { %4044 = vmatmul.mubr.f32.gmra.mxu1 %v4107_v0  ;;  %v4867_v4 = vpop.permute.xlu0 %376  ;;  %3966 = vmatprep.mubr.f32.mxu0 %v4108_v11  ;;  %v606_v25 = vadd.f32 %v3488_v55, %v4865_v22  ;;  %v881_v12 = vadd.f32 %v3568_v56, %v4865_v22  ;;  %v3497_v6 = vpop.f32.mrf.mxu0 }
 0x138   : > { %4046 = vmatprep.mubr.f32.mxu1 %v4108_v11  ;;  %v601_v15 = vadd.f32 %v600_v60, %v4867_v4  ;;  %v876_v26 = vadd.f32 %v875_v63, %v4867_v4  ;;  %v3577_v9 = vpop.f32.mrf.mxu1 }
 0x139   : > { %681 = vst.msk [vmem:[%s4691_s21 + $0xa8] sm:$0xff] %vm659_vm0, %v606_v25  ;;  %2737 = vst.msk [vmem:[%s4691_s21 + $0x1a8] sm:$0xff] %vm659_vm0, %v881_v12  ;;  %v630_v18 = vpop.f32.mrf.mxu0  ;;  %v4116_v12 = vld [vmem:[#allocation2 + $0xe0] sm:$0xff] }
 0x13a   : > { %680 = vst.msk [vmem:[%s4691_s21 + $0xa0] sm:$0xff] %vm659_vm0, %v601_v15  ;;  %3967 = vmatmul.mubr.f32.gmra.mxu0 %v4109_v28  ;;  %2736 = vst.msk [vmem:[%s4691_s21 + $0x1a0] sm:$0xff] %vm659_vm0, %v876_v26  ;;  %v905_v52 = vpop.f32.mrf.mxu1 }
 0x13b   : > { %4047 = vmatmul.mubr.f32.gmra.mxu1 %v4109_v28  ;;  %3969 = vmatprep.mubr.f32.mxu0 %v4110_v29  ;;  %v4881_v30 = vpop.permute.xlu1 %391  ;;  %v3500_v0 = vpop.f32.mrf.mxu0 }
 0x13c   : > { %4049 = vmatprep.mubr.f32.mxu1 %v4110_v29  ;;  %v4883_v35 = vpop.permute.xlu0 %386  ;;  %v616_v36 = vadd.f32 %v3491_v16, %v4881_v30  ;;  %v891_v33 = vadd.f32 %v3571_v19, %v4881_v30  ;;  %v3580_v11 = vpop.f32.mrf.mxu1  ;;  %v4117_v19 = vld [vmem:[#allocation2 + $0xe8] sm:$0xff] }
 0x13d   : > { %v611_v39 = vadd.f32 %v610_v20, %v4883_v35  ;;  %v886_v34 = vadd.f32 %v885_v27, %v4883_v35  ;;  %v640_v15 = vpop.f32.mrf.mxu0 }
 0x13e   : > { %3970 = vmatmul.mubr.f32.gmra.mxu0 %v4111_v42  ;;  %683 = vst.msk [vmem:[%s4691_s21 + $0xb8] sm:$0xff] %vm659_vm0, %v616_v36  ;;  %2739 = vst.msk [vmem:[%s4691_s21 + $0x1b8] sm:$0xff] %vm659_vm0, %v891_v33  ;;  %v915_v16 = vpop.f32.mrf.mxu1  ;;  %v4118_v33 = vld [vmem:[#allocation2 + $0xf0] sm:$0xff] }
 0x13f   : > { %4050 = vmatmul.mubr.f32.gmra.mxu1 %v4111_v42  ;;  %682 = vst.msk [vmem:[%s4691_s21 + $0xb0] sm:$0xff] %vm659_vm0, %v611_v39  ;;  %2738 = vst.msk [vmem:[%s4691_s21 + $0x1b0] sm:$0xff] %vm659_vm0, %v886_v34  ;;  %3972 = vmatprep.mubr.f32.mxu0 %v4112_v53  ;;  %v3503_v39 = vpop.f32.mrf.mxu0  ;;  %v4119_v42 = vld [vmem:[#allocation2 + $0xf8] sm:$0xff] }
 0x140   : > { %4052 = vmatprep.mubr.f32.mxu1 %v4112_v53  ;;  %v4897_v54 = vpop.permute.xlu1 %401  ;;  %v3583_v34 = vpop.f32.mrf.mxu1 }
 0x141   : > { %v4899_v57 = vpop.permute.xlu0 %396  ;;  %v626_v62 = vadd.f32 %v3494_v38, %v4897_v54  ;;  %v901_v1 = vadd.f32 %v3574_v41, %v4897_v54  ;;  %v650_v38 = vpop.f32.mrf.mxu0 }
 0x142   : > { %v621_v2 = vadd.f32 %v620_v45, %v4899_v57  ;;  %v896_v5 = vadd.f32 %v895_v50, %v4899_v57  ;;  %3973 = vmatmul.mubr.f32.gmra.mxu0 %v4113_v14  ;;  %v925_v41 = vpop.f32.mrf.mxu1 }
 0x143   : > { %4053 = vmatmul.mubr.f32.gmra.mxu1 %v4113_v14  ;;  %685 = vst.msk [vmem:[%s4691_s21 + $0xc8] sm:$0xff] %vm659_vm0, %v626_v62  ;;  %2741 = vst.msk [vmem:[%s4691_s21 + $0x1c8] sm:$0xff] %vm659_vm0, %v901_v1  ;;  %3975 = vmatprep.mubr.f32.mxu0 %v4114_v44 }
 0x144   : > { %684 = vst.msk [vmem:[%s4691_s21 + $0xc0] sm:$0xff] %vm659_vm0, %v621_v2  ;;  %2740 = vst.msk [vmem:[%s4691_s21 + $0x1c0] sm:$0xff] %vm659_vm0, %v896_v5  ;;  %4055 = vmatprep.mubr.f32.mxu1 %v4114_v44  ;;  %v3618_v5 = vpop.f32.mrf.mxu0 }
 0x145   : > { %v4913_v55 = vpop.permute.xlu1 %411 }
 0x146   : > { %v4915_v56 = vpop.permute.xlu0 %406  ;;  %3976 = vmatmul.mubr.f32.gmra.mxu0 %v4115_v21  ;;  %v636_v59 = vadd.f32 %v3497_v6, %v4913_v55  ;;  %v911_v60 = vadd.f32 %v3577_v9, %v4913_v55  ;;  %v3698_v6 = vpop.f32.mrf.mxu1  ;;  %v1056_v9 = vadd.f32 %v3618_v5, %v4695_v17 }
 0x147   : > { %4056 = vmatmul.mubr.f32.gmra.mxu1 %v4115_v21  ;;  %v631_v63 = vadd.f32 %v630_v18, %v4915_v56  ;;  %v906_v25 = vadd.f32 %v905_v52, %v4915_v56  ;;  %3978 = vmatprep.mubr.f32.mxu0 %v4116_v12  ;;  %v1331_v14 = vadd.f32 %v3698_v6, %v4695_v17  ;;  %v1050_v44 = vpop.f32.mrf.mxu0 }
 0x148   : > { %4058 = vmatprep.mubr.f32.mxu1 %v4116_v12  ;;  %687 = vst.msk [vmem:[%s4691_s21 + $0xd8] sm:$0xff] %vm659_vm0, %v636_v59  ;;  %2743 = vst.msk [vmem:[%s4691_s21 + $0x1d8] sm:$0xff] %vm659_vm0, %v911_v60  ;;  %v1325_v18 = vpop.f32.mrf.mxu1  ;;  %v1051_v52 = vadd.f32 %v1050_v44, %v4677_v43 }
 0x149   : > { %686 = vst.msk [vmem:[%s4691_s21 + $0xd0] sm:$0xff] %vm659_vm0, %v631_v63  ;;  %2742 = vst.msk [vmem:[%s4691_s21 + $0x1d0] sm:$0xff] %vm659_vm0, %v906_v25  ;;  %v1326_v21 = vadd.f32 %v1325_v18, %v4677_v43  ;;  %v3621_v59 = vpop.f32.mrf.mxu0 }
 0x14a   : > { %3979 = vmatmul.mubr.f32.gmra.mxu0 %v4117_v19  ;;  %v4929_v26 = vpop.permute.xlu1 %421  ;;  %2765 = vst.msk [vmem:[%s4691_s21 + $0x208] sm:$0xff] %vm659_vm0, %v1056_v9  ;;  %2813 = vst.msk [vmem:[%s4691_s21 + $0x308] sm:$0xff] %vm659_vm0, %v1331_v14  ;;  %v3701_v60 = vpop.f32.mrf.mxu1  ;;  %v1066_v63 = vadd.f32 %v3621_v59, %v4715_v3 }
 0x14b   : > { %4059 = vmatmul.mubr.f32.gmra.mxu1 %v4117_v19  ;;  %v4931_v20 = vpop.permute.xlu0 %416  ;;  %v646_v27 = vadd.f32 %v3500_v0, %v4929_v26  ;;  %v921_v28 = vadd.f32 %v3580_v11, %v4929_v26  ;;  %3981 = vmatprep.mubr.f32.mxu0 %v4118_v33  ;;  %2764 = vst.msk [vmem:[%s4691_s21 + $0x200] sm:$0xff] %vm659_vm0, %v1051_v52  ;;  %2812 = vst.msk [vmem:[%s4691_s21 + $0x300] sm:$0xff] %vm659_vm0, %v1326_v21  ;;  %v1060_v11 = vpop.f32.mrf.mxu0 }
 0x14c   : > { %v641_v29 = vadd.f32 %v640_v15, %v4931_v20  ;;  %v916_v36 = vadd.f32 %v915_v16, %v4931_v20  ;;  %4061 = vmatprep.mubr.f32.mxu1 %v4118_v33  ;;  %v1341_v0 = vadd.f32 %v3701_v60, %v4715_v3  ;;  %v1335_v25 = vpop.f32.mrf.mxu1  ;;  %2767 = vst.msk [vmem:[%s4691_s21 + $0x218] sm:$0xff] %vm659_vm0, %v1066_v63 }
 0x14d   : > { %689 = vst.msk [vmem:[%s4691_s21 + $0xe8] sm:$0xff] %vm659_vm0, %v646_v27  ;;  %2745 = vst.msk [vmem:[%s4691_s21 + $0x1e8] sm:$0xff] %vm659_vm0, %v921_v28  ;;  %v1061_v12 = vadd.f32 %v1060_v11, %v4686_v48  ;;  %v1336_v15 = vadd.f32 %v1335_v25, %v4686_v48  ;;  %v3624_v16 = vpop.f32.mrf.mxu0 }
 0x14e   : > { %688 = vst.msk [vmem:[%s4691_s21 + $0xe0] sm:$0xff] %vm659_vm0, %v641_v29  ;;  %2744 = vst.msk [vmem:[%s4691_s21 + $0x1e0] sm:$0xff] %vm659_vm0, %v916_v36  ;;  %3982 = vmatmul.mubr.f32.gmra.mxu0 %v4119_v42  ;;  %v3704_v19 = vpop.f32.mrf.mxu1  ;;  %v1076_v27 = vadd.f32 %v3624_v16, %v4737_v23 }
 0x14f   : > { %4062 = vmatmul.mubr.f32.gmra.mxu1 %v4119_v42  ;;  %v4945_v45 = vpop.permute.xlu1 %431  ;;  %2815 = vst.msk [vmem:[%s4691_s21 + $0x318] sm:$0xff] %vm659_vm0, %v1341_v0  ;;  %2766 = vst.msk [vmem:[%s4691_s21 + $0x210] sm:$0xff] %vm659_vm0, %v1061_v12  ;;  %v1351_v28 = vadd.f32 %v3704_v19, %v4737_v23  ;;  %v1070_v29 = vpop.f32.mrf.mxu0 }
 0x150   : > { %v4947_v50 = vpop.permute.xlu0 %426  ;;  %v656_v53 = vadd.f32 %v3503_v39, %v4945_v45  ;;  %v931_v62 = vadd.f32 %v3583_v34, %v4945_v45  ;;  %2814 = vst.msk [vmem:[%s4691_s21 + $0x310] sm:$0xff] %vm659_vm0, %v1336_v15  ;;  %v1345_v36 = vpop.f32.mrf.mxu1  ;;  %2769 = vst.msk [vmem:[%s4691_s21 + $0x228] sm:$0xff] %vm659_vm0, %v1076_v27  ;;  %v1071_v33 = vadd.f32 %v1070_v29, %v4739_v24 }
 0x151   : > { %v651_v1 = vadd.f32 %v650_v38, %v4947_v50  ;;  %v926_v2 = vadd.f32 %v925_v41, %v4947_v50  ;;  %2817 = vst.msk [vmem:[%s4691_s21 + $0x328] sm:$0xff] %vm659_vm0, %v1351_v28  ;;  %v1346_v39 = vadd.f32 %v1345_v36, %v4739_v24  ;;  %v3627_v34 = vpop.f32.mrf.mxu0 }
 0x152   : > { %691 = vst.msk [vmem:[%s4691_s21 + $0xf8] sm:$0xff] %vm659_vm0, %v656_v53  ;;  %2747 = vst.msk [vmem:[%s4691_s21 + $0x1f8] sm:$0xff] %vm659_vm0, %v931_v62  ;;  %v3707_v38 = vpop.f32.mrf.mxu1  ;;  %v1086_v41 = vadd.f32 %v3627_v34, %v4753_v40 }
 0x153   : > { %690 = vst.msk [vmem:[%s4691_s21 + $0xf0] sm:$0xff] %vm659_vm0, %v651_v1  ;;  %2746 = vst.msk [vmem:[%s4691_s21 + $0x1f0] sm:$0xff] %vm659_vm0, %v926_v2  ;;  %v1361_v42 = vadd.f32 %v3707_v38, %v4753_v40  ;;  %v1080_v53 = vpop.f32.mrf.mxu0 }
 0x154   : > { %2768 = vst.msk [vmem:[%s4691_s21 + $0x220] sm:$0xff] %vm659_vm0, %v1071_v33  ;;  %2816 = vst.msk [vmem:[%s4691_s21 + $0x320] sm:$0xff] %vm659_vm0, %v1346_v39  ;;  %v1355_v62 = vpop.f32.mrf.mxu1  ;;  %v1081_v1 = vadd.f32 %v1080_v53, %v4755_v37 }
 0x155   : > { %2771 = vst.msk [vmem:[%s4691_s21 + $0x238] sm:$0xff] %vm659_vm0, %v1086_v41  ;;  %2819 = vst.msk [vmem:[%s4691_s21 + $0x338] sm:$0xff] %vm659_vm0, %v1361_v42  ;;  %v1356_v2 = vadd.f32 %v1355_v62, %v4755_v37  ;;  %v3630_v5 = vpop.f32.mrf.mxu0 }
 0x156   : > { %v3710_v6 = vpop.f32.mrf.mxu1  ;;  %2770 = vst.msk [vmem:[%s4691_s21 + $0x230] sm:$0xff] %vm659_vm0, %v1081_v1  ;;  %v1096_v9 = vadd.f32 %v3630_v5, %v4769_v58 }
 0x157   : > { %2818 = vst.msk [vmem:[%s4691_s21 + $0x330] sm:$0xff] %vm659_vm0, %v1356_v2  ;;  %v1371_v14 = vadd.f32 %v3710_v6, %v4769_v58  ;;  %v1090_v44 = vpop.f32.mrf.mxu0 }
 0x158   : > { %v1365_v18 = vpop.f32.mrf.mxu1  ;;  %2773 = vst.msk [vmem:[%s4691_s21 + $0x248] sm:$0xff] %vm659_vm0, %v1096_v9  ;;  %v1091_v52 = vadd.f32 %v1090_v44, %v4771_v61 }
 0x159   : > { %2821 = vst.msk [vmem:[%s4691_s21 + $0x348] sm:$0xff] %vm659_vm0, %v1371_v14  ;;  %v1366_v21 = vadd.f32 %v1365_v18, %v4771_v61 }
 0x15a   : > { %v3633_v59 = vpop.f32.mrf.mxu0  ;;  %2772 = vst.msk [vmem:[%s4691_s21 + $0x240] sm:$0xff] %vm659_vm0, %v1091_v52 }
 0x15b   : > { %v3713_v60 = vpop.f32.mrf.mxu1  ;;  %2820 = vst.msk [vmem:[%s4691_s21 + $0x340] sm:$0xff] %vm659_vm0, %v1366_v21  ;;  %v1106_v63 = vadd.f32 %v3633_v59, %v4785_v47 }
 0x15c   : > { %v1381_v0 = vadd.f32 %v3713_v60, %v4785_v47  ;;  %v1100_v11 = vpop.f32.mrf.mxu0 }
 0x15d   : > { %v1375_v25 = vpop.f32.mrf.mxu1  ;;  %2775 = vst.msk [vmem:[%s4691_s21 + $0x258] sm:$0xff] %vm659_vm0, %v1106_v63  ;;  %v1101_v12 = vadd.f32 %v1100_v11, %v4787_v51 }
 0x15e   : > { %2823 = vst.msk [vmem:[%s4691_s21 + $0x358] sm:$0xff] %vm659_vm0, %v1381_v0  ;;  %v1376_v15 = vadd.f32 %v1375_v25, %v4787_v51 }
 0x15f   : > { %v3636_v16 = vpop.f32.mrf.mxu0  ;;  %2774 = vst.msk [vmem:[%s4691_s21 + $0x250] sm:$0xff] %vm659_vm0, %v1101_v12 }
 0x160   : > { %v3716_v19 = vpop.f32.mrf.mxu1  ;;  %2822 = vst.msk [vmem:[%s4691_s21 + $0x350] sm:$0xff] %vm659_vm0, %v1376_v15  ;;  %v1116_v27 = vadd.f32 %v3636_v16, %v4801_v7 }
 0x161   : > { %v1391_v28 = vadd.f32 %v3716_v19, %v4801_v7  ;;  %v1110_v29 = vpop.f32.mrf.mxu0 }
 0x162   : > { %v1385_v36 = vpop.f32.mrf.mxu1  ;;  %2777 = vst.msk [vmem:[%s4691_s21 + $0x268] sm:$0xff] %vm659_vm0, %v1116_v27  ;;  %v1111_v33 = vadd.f32 %v1110_v29, %v4803_v8 }
 0x163   : > { %2825 = vst.msk [vmem:[%s4691_s21 + $0x368] sm:$0xff] %vm659_vm0, %v1391_v28  ;;  %v1386_v39 = vadd.f32 %v1385_v36, %v4803_v8 }
 0x164   : > { %v3639_v34 = vpop.f32.mrf.mxu0  ;;  %2776 = vst.msk [vmem:[%s4691_s21 + $0x260] sm:$0xff] %vm659_vm0, %v1111_v33 }
 0x165   : > { %v3719_v38 = vpop.f32.mrf.mxu1  ;;  %2824 = vst.msk [vmem:[%s4691_s21 + $0x360] sm:$0xff] %vm659_vm0, %v1386_v39  ;;  %v1126_v41 = vadd.f32 %v3639_v34, %v4817_v31 }
 0x166   : > { %v1401_v42 = vadd.f32 %v3719_v38, %v4817_v31  ;;  %v1120_v53 = vpop.f32.mrf.mxu0 }
 0x167   : > { %v1395_v62 = vpop.f32.mrf.mxu1  ;;  %2779 = vst.msk [vmem:[%s4691_s21 + $0x278] sm:$0xff] %vm659_vm0, %v1126_v41  ;;  %v1121_v1 = vadd.f32 %v1120_v53, %v4819_v32 }
 0x168   : > { %2827 = vst.msk [vmem:[%s4691_s21 + $0x378] sm:$0xff] %vm659_vm0, %v1401_v42  ;;  %v1396_v2 = vadd.f32 %v1395_v62, %v4819_v32 }
 0x169   : > { %v3642_v5 = vpop.f32.mrf.mxu0  ;;  %2778 = vst.msk [vmem:[%s4691_s21 + $0x270] sm:$0xff] %vm659_vm0, %v1121_v1 }
 0x16a   : > { %v3722_v6 = vpop.f32.mrf.mxu1  ;;  %2826 = vst.msk [vmem:[%s4691_s21 + $0x370] sm:$0xff] %vm659_vm0, %v1396_v2  ;;  %v1136_v9 = vadd.f32 %v3642_v5, %v4833_v46 }
 0x16b   : > { %v1411_v14 = vadd.f32 %v3722_v6, %v4833_v46  ;;  %v1130_v44 = vpop.f32.mrf.mxu0 }
 0x16c   : > { %v1405_v18 = vpop.f32.mrf.mxu1  ;;  %2781 = vst.msk [vmem:[%s4691_s21 + $0x288] sm:$0xff] %vm659_vm0, %v1136_v9  ;;  %v1131_v52 = vadd.f32 %v1130_v44, %v4835_v49 }
 0x16d   : > { %2829 = vst.msk [vmem:[%s4691_s21 + $0x388] sm:$0xff] %vm659_vm0, %v1411_v14  ;;  %v1406_v21 = vadd.f32 %v1405_v18, %v4835_v49 }
 0x16e   : > { %v3645_v59 = vpop.f32.mrf.mxu0  ;;  %2780 = vst.msk [vmem:[%s4691_s21 + $0x280] sm:$0xff] %vm659_vm0, %v1131_v52 }
 0x16f   : > { %v3725_v60 = vpop.f32.mrf.mxu1  ;;  %2828 = vst.msk [vmem:[%s4691_s21 + $0x380] sm:$0xff] %vm659_vm0, %v1406_v21  ;;  %v1146_v63 = vadd.f32 %v3645_v59, %v4849_v10 }
 0x170   : > { %v1421_v0 = vadd.f32 %v3725_v60, %v4849_v10  ;;  %v1140_v11 = vpop.f32.mrf.mxu0 }
 0x171   : > { %v1415_v25 = vpop.f32.mrf.mxu1  ;;  %2783 = vst.msk [vmem:[%s4691_s21 + $0x298] sm:$0xff] %vm659_vm0, %v1146_v63  ;;  %v1141_v12 = vadd.f32 %v1140_v11, %v4851_v13 }
 0x172   : > { %2831 = vst.msk [vmem:[%s4691_s21 + $0x398] sm:$0xff] %vm659_vm0, %v1421_v0  ;;  %v1416_v15 = vadd.f32 %v1415_v25, %v4851_v13 }
 0x173   : > { %v3648_v16 = vpop.f32.mrf.mxu0  ;;  %2782 = vst.msk [vmem:[%s4691_s21 + $0x290] sm:$0xff] %vm659_vm0, %v1141_v12 }
 0x174   : > { %v3728_v19 = vpop.f32.mrf.mxu1  ;;  %2830 = vst.msk [vmem:[%s4691_s21 + $0x390] sm:$0xff] %vm659_vm0, %v1416_v15  ;;  %v1156_v27 = vadd.f32 %v3648_v16, %v4865_v22 }
 0x175   : > { %v1431_v28 = vadd.f32 %v3728_v19, %v4865_v22  ;;  %v1150_v29 = vpop.f32.mrf.mxu0 }
 0x176   : > { %v1425_v36 = vpop.f32.mrf.mxu1  ;;  %2785 = vst.msk [vmem:[%s4691_s21 + $0x2a8] sm:$0xff] %vm659_vm0, %v1156_v27  ;;  %v1151_v33 = vadd.f32 %v1150_v29, %v4867_v4 }
 0x177   : > { %2833 = vst.msk [vmem:[%s4691_s21 + $0x3a8] sm:$0xff] %vm659_vm0, %v1431_v28  ;;  %v1426_v39 = vadd.f32 %v1425_v36, %v4867_v4 }
 0x178   : > { %v3651_v34 = vpop.f32.mrf.mxu0  ;;  %2784 = vst.msk [vmem:[%s4691_s21 + $0x2a0] sm:$0xff] %vm659_vm0, %v1151_v33 }
 0x179   : > { %v3731_v38 = vpop.f32.mrf.mxu1  ;;  %2832 = vst.msk [vmem:[%s4691_s21 + $0x3a0] sm:$0xff] %vm659_vm0, %v1426_v39  ;;  %v1166_v41 = vadd.f32 %v3651_v34, %v4881_v30 }
 0x17a   : > { %v1441_v42 = vadd.f32 %v3731_v38, %v4881_v30  ;;  %v1160_v53 = vpop.f32.mrf.mxu0 }
 0x17b   : > { %v1435_v62 = vpop.f32.mrf.mxu1  ;;  %2787 = vst.msk [vmem:[%s4691_s21 + $0x2b8] sm:$0xff] %vm659_vm0, %v1166_v41  ;;  %v1161_v1 = vadd.f32 %v1160_v53, %v4883_v35 }
 0x17c   : > { %2835 = vst.msk [vmem:[%s4691_s21 + $0x3b8] sm:$0xff] %vm659_vm0, %v1441_v42  ;;  %v1436_v2 = vadd.f32 %v1435_v62, %v4883_v35 }
 0x17d   : > { %v3654_v5 = vpop.f32.mrf.mxu0  ;;  %2786 = vst.msk [vmem:[%s4691_s21 + $0x2b0] sm:$0xff] %vm659_vm0, %v1161_v1 }
 0x17e   : > { %v3734_v6 = vpop.f32.mrf.mxu1  ;;  %2834 = vst.msk [vmem:[%s4691_s21 + $0x3b0] sm:$0xff] %vm659_vm0, %v1436_v2  ;;  %v1176_v9 = vadd.f32 %v3654_v5, %v4897_v54 }
 0x17f   : > { %v1451_v14 = vadd.f32 %v3734_v6, %v4897_v54  ;;  %v1170_v44 = vpop.f32.mrf.mxu0 }
 0x180   : > { %v1445_v18 = vpop.f32.mrf.mxu1  ;;  %2789 = vst.msk [vmem:[%s4691_s21 + $0x2c8] sm:$0xff] %vm659_vm0, %v1176_v9  ;;  %v1171_v52 = vadd.f32 %v1170_v44, %v4899_v57 }
 0x181   : > { %2837 = vst.msk [vmem:[%s4691_s21 + $0x3c8] sm:$0xff] %vm659_vm0, %v1451_v14  ;;  %v1446_v21 = vadd.f32 %v1445_v18, %v4899_v57 }
 0x182   : > { %v3657_v59 = vpop.f32.mrf.mxu0  ;;  %2788 = vst.msk [vmem:[%s4691_s21 + $0x2c0] sm:$0xff] %vm659_vm0, %v1171_v52 }
 0x183   : > { %v3737_v60 = vpop.f32.mrf.mxu1  ;;  %2836 = vst.msk [vmem:[%s4691_s21 + $0x3c0] sm:$0xff] %vm659_vm0, %v1446_v21  ;;  %v1186_v63 = vadd.f32 %v3657_v59, %v4913_v55 }
 0x184   : > { %v1461_v0 = vadd.f32 %v3737_v60, %v4913_v55  ;;  %v1180_v11 = vpop.f32.mrf.mxu0 }
 0x185   : > { %v1455_v25 = vpop.f32.mrf.mxu1  ;;  %2791 = vst.msk [vmem:[%s4691_s21 + $0x2d8] sm:$0xff] %vm659_vm0, %v1186_v63  ;;  %v1181_v12 = vadd.f32 %v1180_v11, %v4915_v56 }
 0x186   : > { %2839 = vst.msk [vmem:[%s4691_s21 + $0x3d8] sm:$0xff] %vm659_vm0, %v1461_v0  ;;  %v1456_v15 = vadd.f32 %v1455_v25, %v4915_v56 }
 0x187   : > { %v3660_v16 = vpop.f32.mrf.mxu0  ;;  %2790 = vst.msk [vmem:[%s4691_s21 + $0x2d0] sm:$0xff] %vm659_vm0, %v1181_v12 }
 0x188   : > { %v3740_v19 = vpop.f32.mrf.mxu1  ;;  %2838 = vst.msk [vmem:[%s4691_s21 + $0x3d0] sm:$0xff] %vm659_vm0, %v1456_v15  ;;  %v1196_v27 = vadd.f32 %v3660_v16, %v4929_v26 }
 0x189   : > { %v1471_v28 = vadd.f32 %v3740_v19, %v4929_v26  ;;  %v1190_v29 = vpop.f32.mrf.mxu0 }
 0x18a   : > { %v1465_v36 = vpop.f32.mrf.mxu1  ;;  %2793 = vst.msk [vmem:[%s4691_s21 + $0x2e8] sm:$0xff] %vm659_vm0, %v1196_v27  ;;  %v1191_v33 = vadd.f32 %v1190_v29, %v4931_v20 }
 0x18b   : > { %2841 = vst.msk [vmem:[%s4691_s21 + $0x3e8] sm:$0xff] %vm659_vm0, %v1471_v28  ;;  %v1466_v39 = vadd.f32 %v1465_v36, %v4931_v20 }
 0x18c   : > { %v3663_v34 = vpop.f32.mrf.mxu0  ;;  %2792 = vst.msk [vmem:[%s4691_s21 + $0x2e0] sm:$0xff] %vm659_vm0, %v1191_v33 }
 0x18d   : > { %v3743_v38 = vpop.f32.mrf.mxu1  ;;  %2840 = vst.msk [vmem:[%s4691_s21 + $0x3e0] sm:$0xff] %vm659_vm0, %v1466_v39  ;;  %v1206_v41 = vadd.f32 %v3663_v34, %v4945_v45 }
 0x18e   : > { %v1481_v42 = vadd.f32 %v3743_v38, %v4945_v45  ;;  %v1200_v53 = vpop.f32.mrf.mxu0 }
 0x18f   : > { %v1475_v62 = vpop.f32.mrf.mxu1  ;;  %2795 = vst.msk [vmem:[%s4691_s21 + $0x2f8] sm:$0xff] %vm659_vm0, %v1206_v41  ;;  %v1201_v1 = vadd.f32 %v1200_v53, %v4947_v50 }
 0x190   : > { %2843 = vst.msk [vmem:[%s4691_s21 + $0x3f8] sm:$0xff] %vm659_vm0, %v1481_v42  ;;  %v1476_v2 = vadd.f32 %v1475_v62, %v4947_v50 }
 0x191   : > { %2794 = vst.msk [vmem:[%s4691_s21 + $0x2f0] sm:$0xff] %vm659_vm0, %v1201_v1  ;;  %v3778_v5 = vpop.f32.mrf.mxu0 }
 0x192   : > { %2842 = vst.msk [vmem:[%s4691_s21 + $0x3f0] sm:$0xff] %vm659_vm0, %v1476_v2  ;;  %v3858_v6 = vpop.f32.mrf.mxu1  ;;  %v1606_v9 = vadd.f32 %v3778_v5, %v4695_v17 }
 0x193   : > { %v1881_v14 = vadd.f32 %v3858_v6, %v4695_v17  ;;  %v1600_v44 = vpop.f32.mrf.mxu0 }
 0x194   : > { %v1875_v18 = vpop.f32.mrf.mxu1  ;;  %2861 = vst.msk [vmem:[%s4691_s21 + $0x408] sm:$0xff] %vm659_vm0, %v1606_v9  ;;  %v1601_v52 = vadd.f32 %v1600_v44, %v4677_v43 }
 0x195   : > { %2909 = vst.msk [vmem:[%s4691_s21 + $0x508] sm:$0xff] %vm659_vm0, %v1881_v14  ;;  %v1876_v21 = vadd.f32 %v1875_v18, %v4677_v43 }
 0x196   : > { %2860 = vst.msk [vmem:[%s4691_s21 + $0x400] sm:$0xff] %vm659_vm0, %v1601_v52  ;;  %v3781_v59 = vpop.f32.mrf.mxu0 }
 0x197   : > { %2908 = vst.msk [vmem:[%s4691_s21 + $0x500] sm:$0xff] %vm659_vm0, %v1876_v21  ;;  %v3861_v60 = vpop.f32.mrf.mxu1  ;;  %v1616_v63 = vadd.f32 %v3781_v59, %v4715_v3 }
 0x198   : > { %v1891_v0 = vadd.f32 %v3861_v60, %v4715_v3  ;;  %v1610_v11 = vpop.f32.mrf.mxu0 }
 0x199   : > { %v1885_v25 = vpop.f32.mrf.mxu1  ;;  %2863 = vst.msk [vmem:[%s4691_s21 + $0x418] sm:$0xff] %vm659_vm0, %v1616_v63  ;;  %v1611_v12 = vadd.f32 %v1610_v11, %v4686_v48 }
 0x19a   : > { %2911 = vst.msk [vmem:[%s4691_s21 + $0x518] sm:$0xff] %vm659_vm0, %v1891_v0  ;;  %v1886_v15 = vadd.f32 %v1885_v25, %v4686_v48  ;;  %v3784_v16 = vpop.f32.mrf.mxu0 }
 0x19b   : > { %v3864_v19 = vpop.f32.mrf.mxu1  ;;  %2862 = vst.msk [vmem:[%s4691_s21 + $0x410] sm:$0xff] %vm659_vm0, %v1611_v12  ;;  %v1626_v27 = vadd.f32 %v3784_v16, %v4737_v23 }
 0x19c   : > { %2910 = vst.msk [vmem:[%s4691_s21 + $0x510] sm:$0xff] %vm659_vm0, %v1886_v15  ;;  %v1901_v28 = vadd.f32 %v3864_v19, %v4737_v23  ;;  %v1620_v29 = vpop.f32.mrf.mxu0 }
 0x19d   : > { %v1895_v36 = vpop.f32.mrf.mxu1  ;;  %2865 = vst.msk [vmem:[%s4691_s21 + $0x428] sm:$0xff] %vm659_vm0, %v1626_v27  ;;  %v1621_v33 = vadd.f32 %v1620_v29, %v4739_v24 }
 0x19e   : > { %2913 = vst.msk [vmem:[%s4691_s21 + $0x528] sm:$0xff] %vm659_vm0, %v1901_v28  ;;  %v1896_v39 = vadd.f32 %v1895_v36, %v4739_v24  ;;  %v3787_v34 = vpop.f32.mrf.mxu0 }
 0x19f   : > { %v3867_v38 = vpop.f32.mrf.mxu1  ;;  %2864 = vst.msk [vmem:[%s4691_s21 + $0x420] sm:$0xff] %vm659_vm0, %v1621_v33  ;;  %v1636_v41 = vadd.f32 %v3787_v34, %v4753_v40 }
 0x1a0   : > { %2912 = vst.msk [vmem:[%s4691_s21 + $0x520] sm:$0xff] %vm659_vm0, %v1896_v39  ;;  %v1911_v42 = vadd.f32 %v3867_v38, %v4753_v40  ;;  %v1630_v53 = vpop.f32.mrf.mxu0 }
 0x1a1   : > { %v1905_v62 = vpop.f32.mrf.mxu1  ;;  %2867 = vst.msk [vmem:[%s4691_s21 + $0x438] sm:$0xff] %vm659_vm0, %v1636_v41  ;;  %v1631_v1 = vadd.f32 %v1630_v53, %v4755_v37 }
 0x1a2   : > { %2915 = vst.msk [vmem:[%s4691_s21 + $0x538] sm:$0xff] %vm659_vm0, %v1911_v42  ;;  %v1906_v2 = vadd.f32 %v1905_v62, %v4755_v37  ;;  %v3790_v5 = vpop.f32.mrf.mxu0 }
 0x1a3   : > { %v3870_v6 = vpop.f32.mrf.mxu1  ;;  %2866 = vst.msk [vmem:[%s4691_s21 + $0x430] sm:$0xff] %vm659_vm0, %v1631_v1  ;;  %v1646_v9 = vadd.f32 %v3790_v5, %v4769_v58 }
 0x1a4   : > { %2914 = vst.msk [vmem:[%s4691_s21 + $0x530] sm:$0xff] %vm659_vm0, %v1906_v2  ;;  %v1921_v14 = vadd.f32 %v3870_v6, %v4769_v58  ;;  %v1640_v44 = vpop.f32.mrf.mxu0 }
 0x1a5   : > { %v1915_v18 = vpop.f32.mrf.mxu1  ;;  %2869 = vst.msk [vmem:[%s4691_s21 + $0x448] sm:$0xff] %vm659_vm0, %v1646_v9  ;;  %v1641_v52 = vadd.f32 %v1640_v44, %v4771_v61 }
 0x1a6   : > { %2917 = vst.msk [vmem:[%s4691_s21 + $0x548] sm:$0xff] %vm659_vm0, %v1921_v14  ;;  %v1916_v21 = vadd.f32 %v1915_v18, %v4771_v61  ;;  %v3793_v59 = vpop.f32.mrf.mxu0 }
 0x1a7   : > { %v3873_v60 = vpop.f32.mrf.mxu1  ;;  %2868 = vst.msk [vmem:[%s4691_s21 + $0x440] sm:$0xff] %vm659_vm0, %v1641_v52  ;;  %v1656_v63 = vadd.f32 %v3793_v59, %v4785_v47 }
 0x1a8   : > { %2916 = vst.msk [vmem:[%s4691_s21 + $0x540] sm:$0xff] %vm659_vm0, %v1916_v21  ;;  %v1931_v0 = vadd.f32 %v3873_v60, %v4785_v47  ;;  %v1650_v11 = vpop.f32.mrf.mxu0 }
 0x1a9   : > { %v1925_v25 = vpop.f32.mrf.mxu1  ;;  %2871 = vst.msk [vmem:[%s4691_s21 + $0x458] sm:$0xff] %vm659_vm0, %v1656_v63  ;;  %v1651_v12 = vadd.f32 %v1650_v11, %v4787_v51 }
 0x1aa   : > { %2919 = vst.msk [vmem:[%s4691_s21 + $0x558] sm:$0xff] %vm659_vm0, %v1931_v0  ;;  %v1926_v15 = vadd.f32 %v1925_v25, %v4787_v51  ;;  %v3796_v16 = vpop.f32.mrf.mxu0 }
 0x1ab   : > { %v3876_v19 = vpop.f32.mrf.mxu1  ;;  %2870 = vst.msk [vmem:[%s4691_s21 + $0x450] sm:$0xff] %vm659_vm0, %v1651_v12  ;;  %v1666_v27 = vadd.f32 %v3796_v16, %v4801_v7 }
 0x1ac   : > { %2918 = vst.msk [vmem:[%s4691_s21 + $0x550] sm:$0xff] %vm659_vm0, %v1926_v15  ;;  %v1941_v28 = vadd.f32 %v3876_v19, %v4801_v7  ;;  %v1660_v29 = vpop.f32.mrf.mxu0 }
 0x1ad   : > { %v1935_v36 = vpop.f32.mrf.mxu1  ;;  %2873 = vst.msk [vmem:[%s4691_s21 + $0x468] sm:$0xff] %vm659_vm0, %v1666_v27  ;;  %v1661_v33 = vadd.f32 %v1660_v29, %v4803_v8 }
 0x1ae   : > { %2921 = vst.msk [vmem:[%s4691_s21 + $0x568] sm:$0xff] %vm659_vm0, %v1941_v28  ;;  %v1936_v39 = vadd.f32 %v1935_v36, %v4803_v8  ;;  %v3799_v34 = vpop.f32.mrf.mxu0 }
 0x1af   : > { %v3879_v38 = vpop.f32.mrf.mxu1  ;;  %2872 = vst.msk [vmem:[%s4691_s21 + $0x460] sm:$0xff] %vm659_vm0, %v1661_v33  ;;  %v1676_v41 = vadd.f32 %v3799_v34, %v4817_v31 }
 0x1b0   : > { %2920 = vst.msk [vmem:[%s4691_s21 + $0x560] sm:$0xff] %vm659_vm0, %v1936_v39  ;;  %v1951_v42 = vadd.f32 %v3879_v38, %v4817_v31  ;;  %v1670_v53 = vpop.f32.mrf.mxu0 }
 0x1b1   : > { %v1945_v62 = vpop.f32.mrf.mxu1  ;;  %2875 = vst.msk [vmem:[%s4691_s21 + $0x478] sm:$0xff] %vm659_vm0, %v1676_v41  ;;  %v1671_v1 = vadd.f32 %v1670_v53, %v4819_v32 }
 0x1b2   : > { %2923 = vst.msk [vmem:[%s4691_s21 + $0x578] sm:$0xff] %vm659_vm0, %v1951_v42  ;;  %v1946_v2 = vadd.f32 %v1945_v62, %v4819_v32  ;;  %v3802_v5 = vpop.f32.mrf.mxu0 }
 0x1b3   : > { %v3882_v6 = vpop.f32.mrf.mxu1  ;;  %2874 = vst.msk [vmem:[%s4691_s21 + $0x470] sm:$0xff] %vm659_vm0, %v1671_v1  ;;  %v1686_v9 = vadd.f32 %v3802_v5, %v4833_v46 }
 0x1b4   : > { %2922 = vst.msk [vmem:[%s4691_s21 + $0x570] sm:$0xff] %vm659_vm0, %v1946_v2  ;;  %v1961_v14 = vadd.f32 %v3882_v6, %v4833_v46  ;;  %v1680_v44 = vpop.f32.mrf.mxu0 }
 0x1b5   : > { %v1955_v18 = vpop.f32.mrf.mxu1  ;;  %2877 = vst.msk [vmem:[%s4691_s21 + $0x488] sm:$0xff] %vm659_vm0, %v1686_v9  ;;  %v1681_v52 = vadd.f32 %v1680_v44, %v4835_v49 }
 0x1b6   : > { %2925 = vst.msk [vmem:[%s4691_s21 + $0x588] sm:$0xff] %vm659_vm0, %v1961_v14  ;;  %v1956_v21 = vadd.f32 %v1955_v18, %v4835_v49  ;;  %v3805_v59 = vpop.f32.mrf.mxu0 }
 0x1b7   : > { %v3885_v60 = vpop.f32.mrf.mxu1  ;;  %2876 = vst.msk [vmem:[%s4691_s21 + $0x480] sm:$0xff] %vm659_vm0, %v1681_v52  ;;  %v1696_v63 = vadd.f32 %v3805_v59, %v4849_v10 }
 0x1b8   : > { %2924 = vst.msk [vmem:[%s4691_s21 + $0x580] sm:$0xff] %vm659_vm0, %v1956_v21  ;;  %v1971_v0 = vadd.f32 %v3885_v60, %v4849_v10  ;;  %v1690_v11 = vpop.f32.mrf.mxu0 }
 0x1b9   : > { %v1965_v25 = vpop.f32.mrf.mxu1  ;;  %2879 = vst.msk [vmem:[%s4691_s21 + $0x498] sm:$0xff] %vm659_vm0, %v1696_v63  ;;  %v1691_v12 = vadd.f32 %v1690_v11, %v4851_v13 }
 0x1ba   : > { %2927 = vst.msk [vmem:[%s4691_s21 + $0x598] sm:$0xff] %vm659_vm0, %v1971_v0  ;;  %v1966_v15 = vadd.f32 %v1965_v25, %v4851_v13  ;;  %v3808_v16 = vpop.f32.mrf.mxu0 }
 0x1bb   : > { %v3888_v19 = vpop.f32.mrf.mxu1  ;;  %2878 = vst.msk [vmem:[%s4691_s21 + $0x490] sm:$0xff] %vm659_vm0, %v1691_v12  ;;  %v1706_v27 = vadd.f32 %v3808_v16, %v4865_v22 }
 0x1bc   : > { %2926 = vst.msk [vmem:[%s4691_s21 + $0x590] sm:$0xff] %vm659_vm0, %v1966_v15  ;;  %v1981_v28 = vadd.f32 %v3888_v19, %v4865_v22  ;;  %v1700_v29 = vpop.f32.mrf.mxu0 }
 0x1bd   : > { %v1975_v36 = vpop.f32.mrf.mxu1  ;;  %2881 = vst.msk [vmem:[%s4691_s21 + $0x4a8] sm:$0xff] %vm659_vm0, %v1706_v27  ;;  %v1701_v33 = vadd.f32 %v1700_v29, %v4867_v4 }
 0x1be   : > { %2929 = vst.msk [vmem:[%s4691_s21 + $0x5a8] sm:$0xff] %vm659_vm0, %v1981_v28  ;;  %v1976_v39 = vadd.f32 %v1975_v36, %v4867_v4  ;;  %v3811_v34 = vpop.f32.mrf.mxu0 }
 0x1bf   : > { %v3891_v38 = vpop.f32.mrf.mxu1  ;;  %2880 = vst.msk [vmem:[%s4691_s21 + $0x4a0] sm:$0xff] %vm659_vm0, %v1701_v33  ;;  %v1716_v41 = vadd.f32 %v3811_v34, %v4881_v30 }
 0x1c0   : > { %2928 = vst.msk [vmem:[%s4691_s21 + $0x5a0] sm:$0xff] %vm659_vm0, %v1976_v39  ;;  %v1991_v42 = vadd.f32 %v3891_v38, %v4881_v30  ;;  %v1710_v53 = vpop.f32.mrf.mxu0 }
 0x1c1   : > { %v1985_v62 = vpop.f32.mrf.mxu1  ;;  %2883 = vst.msk [vmem:[%s4691_s21 + $0x4b8] sm:$0xff] %vm659_vm0, %v1716_v41  ;;  %v1711_v1 = vadd.f32 %v1710_v53, %v4883_v35 }
 0x1c2   : > { %2931 = vst.msk [vmem:[%s4691_s21 + $0x5b8] sm:$0xff] %vm659_vm0, %v1991_v42  ;;  %v1986_v2 = vadd.f32 %v1985_v62, %v4883_v35  ;;  %v3814_v5 = vpop.f32.mrf.mxu0 }
 0x1c3   : > { %v3894_v6 = vpop.f32.mrf.mxu1  ;;  %2882 = vst.msk [vmem:[%s4691_s21 + $0x4b0] sm:$0xff] %vm659_vm0, %v1711_v1  ;;  %v1726_v9 = vadd.f32 %v3814_v5, %v4897_v54 }
 0x1c4   : > { %2930 = vst.msk [vmem:[%s4691_s21 + $0x5b0] sm:$0xff] %vm659_vm0, %v1986_v2  ;;  %v2001_v14 = vadd.f32 %v3894_v6, %v4897_v54  ;;  %v1720_v44 = vpop.f32.mrf.mxu0 }
 0x1c5   : > { %v1995_v18 = vpop.f32.mrf.mxu1  ;;  %2885 = vst.msk [vmem:[%s4691_s21 + $0x4c8] sm:$0xff] %vm659_vm0, %v1726_v9  ;;  %v1721_v52 = vadd.f32 %v1720_v44, %v4899_v57 }
 0x1c6   : > { %2933 = vst.msk [vmem:[%s4691_s21 + $0x5c8] sm:$0xff] %vm659_vm0, %v2001_v14  ;;  %v1996_v21 = vadd.f32 %v1995_v18, %v4899_v57  ;;  %v3817_v59 = vpop.f32.mrf.mxu0 }
 0x1c7   : > { %v3897_v60 = vpop.f32.mrf.mxu1  ;;  %2884 = vst.msk [vmem:[%s4691_s21 + $0x4c0] sm:$0xff] %vm659_vm0, %v1721_v52  ;;  %v1736_v63 = vadd.f32 %v3817_v59, %v4913_v55 }
 0x1c8   : > { %2932 = vst.msk [vmem:[%s4691_s21 + $0x5c0] sm:$0xff] %vm659_vm0, %v1996_v21  ;;  %v2011_v0 = vadd.f32 %v3897_v60, %v4913_v55  ;;  %v1730_v11 = vpop.f32.mrf.mxu0 }
 0x1c9   : > { %v2005_v25 = vpop.f32.mrf.mxu1  ;;  %2887 = vst.msk [vmem:[%s4691_s21 + $0x4d8] sm:$0xff] %vm659_vm0, %v1736_v63  ;;  %v1731_v12 = vadd.f32 %v1730_v11, %v4915_v56 }
 0x1ca   : > { %2935 = vst.msk [vmem:[%s4691_s21 + $0x5d8] sm:$0xff] %vm659_vm0, %v2011_v0  ;;  %v2006_v15 = vadd.f32 %v2005_v25, %v4915_v56  ;;  %v3820_v16 = vpop.f32.mrf.mxu0 }
 0x1cb   : > { %v3900_v19 = vpop.f32.mrf.mxu1  ;;  %2886 = vst.msk [vmem:[%s4691_s21 + $0x4d0] sm:$0xff] %vm659_vm0, %v1731_v12  ;;  %v1746_v27 = vadd.f32 %v3820_v16, %v4929_v26 }
 0x1cc   : > { %2934 = vst.msk [vmem:[%s4691_s21 + $0x5d0] sm:$0xff] %vm659_vm0, %v2006_v15  ;;  %v2021_v28 = vadd.f32 %v3900_v19, %v4929_v26  ;;  %v1740_v29 = vpop.f32.mrf.mxu0 }
 0x1cd   : > { %v2015_v36 = vpop.f32.mrf.mxu1  ;;  %2889 = vst.msk [vmem:[%s4691_s21 + $0x4e8] sm:$0xff] %vm659_vm0, %v1746_v27  ;;  %v1741_v33 = vadd.f32 %v1740_v29, %v4931_v20 }
 0x1ce   : > { %2937 = vst.msk [vmem:[%s4691_s21 + $0x5e8] sm:$0xff] %vm659_vm0, %v2021_v28  ;;  %v2016_v39 = vadd.f32 %v2015_v36, %v4931_v20  ;;  %v3823_v34 = vpop.f32.mrf.mxu0 }
 0x1cf   : > { %v3903_v38 = vpop.f32.mrf.mxu1  ;;  %2888 = vst.msk [vmem:[%s4691_s21 + $0x4e0] sm:$0xff] %vm659_vm0, %v1741_v33  ;;  %v1756_v41 = vadd.f32 %v3823_v34, %v4945_v45 }
 0x1d0   : > { %2936 = vst.msk [vmem:[%s4691_s21 + $0x5e0] sm:$0xff] %vm659_vm0, %v2016_v39  ;;  %v2031_v42 = vadd.f32 %v3903_v38, %v4945_v45  ;;  %v1750_v53 = vpop.f32.mrf.mxu0 }
 0x1d1   : > { %v2025_v62 = vpop.f32.mrf.mxu1  ;;  %2891 = vst.msk [vmem:[%s4691_s21 + $0x4f8] sm:$0xff] %vm659_vm0, %v1756_v41  ;;  %v1751_v1 = vadd.f32 %v1750_v53, %v4947_v50 }
 0x1d2   : > { %2939 = vst.msk [vmem:[%s4691_s21 + $0x5f8] sm:$0xff] %vm659_vm0, %v2031_v42  ;;  %v2026_v2 = vadd.f32 %v2025_v62, %v4947_v50  ;;  %v3938_v5 = vpop.f32.mrf.mxu0 }
 0x1d3   : > { %v4018_v6 = vpop.f32.mrf.mxu1  ;;  %2890 = vst.msk [vmem:[%s4691_s21 + $0x4f0] sm:$0xff] %vm659_vm0, %v1751_v1  ;;  %v2156_v9 = vadd.f32 %v3938_v5, %v4695_v17 }
 0x1d4   : > { %2938 = vst.msk [vmem:[%s4691_s21 + $0x5f0] sm:$0xff] %vm659_vm0, %v2026_v2  ;;  %v2431_v14 = vadd.f32 %v4018_v6, %v4695_v17  ;;  %v2150_v44 = vpop.f32.mrf.mxu0 }
 0x1d5   : > { %v2425_v18 = vpop.f32.mrf.mxu1  ;;  %2957 = vst.msk [vmem:[%s4691_s21 + $0x608] sm:$0xff] %vm659_vm0, %v2156_v9  ;;  %v2151_v52 = vadd.f32 %v2150_v44, %v4677_v43 }
 0x1d6   : > { %3005 = vst.msk [vmem:[%s4691_s21 + $0x708] sm:$0xff] %vm659_vm0, %v2431_v14  ;;  %v2426_v21 = vadd.f32 %v2425_v18, %v4677_v43  ;;  %v3941_v59 = vpop.f32.mrf.mxu0 }
 0x1d7   : > { %v4021_v60 = vpop.f32.mrf.mxu1  ;;  %2956 = vst.msk [vmem:[%s4691_s21 + $0x600] sm:$0xff] %vm659_vm0, %v2151_v52  ;;  %v2166_v17 = vadd.f32 %v3941_v59, %v4715_v3 }
 0x1d8   : > { %3004 = vst.msk [vmem:[%s4691_s21 + $0x700] sm:$0xff] %vm659_vm0, %v2426_v21  ;;  %v2441_v63 = vadd.f32 %v4021_v60, %v4715_v3  ;;  %v2160_v0 = vpop.f32.mrf.mxu0 }
 0x1d9   : > { %v2435_v11 = vpop.f32.mrf.mxu1  ;;  %2959 = vst.msk [vmem:[%s4691_s21 + $0x618] sm:$0xff] %vm659_vm0, %v2166_v17  ;;  %v2161_v43 = vadd.f32 %v2160_v0, %v4686_v48 }
 0x1da   : > { %3007 = vst.msk [vmem:[%s4691_s21 + $0x718] sm:$0xff] %vm659_vm0, %v2441_v63  ;;  %v2436_v25 = vadd.f32 %v2435_v11, %v4686_v48  ;;  %v3944_v12 = vpop.f32.mrf.mxu0 }
 0x1db   : > { %v4024_v15 = vpop.f32.mrf.mxu1  ;;  %2958 = vst.msk [vmem:[%s4691_s21 + $0x610] sm:$0xff] %vm659_vm0, %v2161_v43  ;;  %v2176_v3 = vadd.f32 %v3944_v12, %v4737_v23 }
 0x1dc   : > { %3006 = vst.msk [vmem:[%s4691_s21 + $0x710] sm:$0xff] %vm659_vm0, %v2436_v25  ;;  %v2451_v16 = vadd.f32 %v4024_v15, %v4737_v23  ;;  %v2170_v19 = vpop.f32.mrf.mxu0 }
 0x1dd   : > { %v2445_v27 = vpop.f32.mrf.mxu1  ;;  %2961 = vst.msk [vmem:[%s4691_s21 + $0x628] sm:$0xff] %vm659_vm0, %v2176_v3  ;;  %v2171_v48 = vadd.f32 %v2170_v19, %v4739_v24 }
 0x1de   : > { %3009 = vst.msk [vmem:[%s4691_s21 + $0x728] sm:$0xff] %vm659_vm0, %v2451_v16  ;;  %v2446_v28 = vadd.f32 %v2445_v27, %v4739_v24  ;;  %v3947_v29 = vpop.f32.mrf.mxu0 }
 0x1df   : > { %v4027_v36 = vpop.f32.mrf.mxu1  ;;  %2960 = vst.msk [vmem:[%s4691_s21 + $0x620] sm:$0xff] %vm659_vm0, %v2171_v48  ;;  %v2186_v23 = vadd.f32 %v3947_v29, %v4753_v40 }
 0x1e0   : > { %3008 = vst.msk [vmem:[%s4691_s21 + $0x720] sm:$0xff] %vm659_vm0, %v2446_v28  ;;  %v2461_v33 = vadd.f32 %v4027_v36, %v4753_v40  ;;  %v2180_v39 = vpop.f32.mrf.mxu0 }
 0x1e1   : > { %v2455_v34 = vpop.f32.mrf.mxu1  ;;  %2963 = vst.msk [vmem:[%s4691_s21 + $0x638] sm:$0xff] %vm659_vm0, %v2186_v23  ;;  %v2181_v24 = vadd.f32 %v2180_v39, %v4755_v37 }
 0x1e2   : > { %3011 = vst.msk [vmem:[%s4691_s21 + $0x738] sm:$0xff] %vm659_vm0, %v2461_v33  ;;  %v2456_v38 = vadd.f32 %v2455_v34, %v4755_v37  ;;  %v3950_v41 = vpop.f32.mrf.mxu0 }
 0x1e3   : > { %v4030_v42 = vpop.f32.mrf.mxu1  ;;  %2962 = vst.msk [vmem:[%s4691_s21 + $0x630] sm:$0xff] %vm659_vm0, %v2181_v24  ;;  %v2196_v40 = vadd.f32 %v3950_v41, %v4769_v58 }
 0x1e4   : > { %3010 = vst.msk [vmem:[%s4691_s21 + $0x730] sm:$0xff] %vm659_vm0, %v2456_v38  ;;  %v2471_v53 = vadd.f32 %v4030_v42, %v4769_v58  ;;  %v2190_v62 = vpop.f32.mrf.mxu0 }
 0x1e5   : > { %v2465_v1 = vpop.f32.mrf.mxu1  ;;  %2965 = vst.msk [vmem:[%s4691_s21 + $0x648] sm:$0xff] %vm659_vm0, %v2196_v40  ;;  %v2191_v37 = vadd.f32 %v2190_v62, %v4771_v61 }
 0x1e6   : > { %3013 = vst.msk [vmem:[%s4691_s21 + $0x748] sm:$0xff] %vm659_vm0, %v2471_v53  ;;  %v2466_v2 = vadd.f32 %v2465_v1, %v4771_v61  ;;  %v3953_v5 = vpop.f32.mrf.mxu0 }
 0x1e7   : > { %v4033_v6 = vpop.f32.mrf.mxu1  ;;  %2964 = vst.msk [vmem:[%s4691_s21 + $0x640] sm:$0xff] %vm659_vm0, %v2191_v37  ;;  %v2206_v58 = vadd.f32 %v3953_v5, %v4785_v47 }
 0x1e8   : > { %3012 = vst.msk [vmem:[%s4691_s21 + $0x740] sm:$0xff] %vm659_vm0, %v2466_v2  ;;  %v2481_v9 = vadd.f32 %v4033_v6, %v4785_v47  ;;  %v2200_v14 = vpop.f32.mrf.mxu0 }
 0x1e9   : > { %v2475_v44 = vpop.f32.mrf.mxu1  ;;  %2967 = vst.msk [vmem:[%s4691_s21 + $0x658] sm:$0xff] %vm659_vm0, %v2206_v58  ;;  %v2201_v61 = vadd.f32 %v2200_v14, %v4787_v51 }
 0x1ea   : > { %3015 = vst.msk [vmem:[%s4691_s21 + $0x758] sm:$0xff] %vm659_vm0, %v2481_v9  ;;  %v2476_v18 = vadd.f32 %v2475_v44, %v4787_v51  ;;  %v3956_v52 = vpop.f32.mrf.mxu0 }
 0x1eb   : > { %v4036_v21 = vpop.f32.mrf.mxu1  ;;  %2966 = vst.msk [vmem:[%s4691_s21 + $0x650] sm:$0xff] %vm659_vm0, %v2201_v61  ;;  %v2216_v47 = vadd.f32 %v3956_v52, %v4801_v7 }
 0x1ec   : > { %3014 = vst.msk [vmem:[%s4691_s21 + $0x750] sm:$0xff] %vm659_vm0, %v2476_v18  ;;  %v2491_v59 = vadd.f32 %v4036_v21, %v4801_v7  ;;  %v2210_v60 = vpop.f32.mrf.mxu0 }
 0x1ed   : > { %v2485_v17 = vpop.f32.mrf.mxu1  ;;  %2969 = vst.msk [vmem:[%s4691_s21 + $0x668] sm:$0xff] %vm659_vm0, %v2216_v47  ;;  %v2211_v51 = vadd.f32 %v2210_v60, %v4803_v8 }
 0x1ee   : > { %3017 = vst.msk [vmem:[%s4691_s21 + $0x768] sm:$0xff] %vm659_vm0, %v2491_v59  ;;  %v2486_v63 = vadd.f32 %v2485_v17, %v4803_v8  ;;  %v3959_v0 = vpop.f32.mrf.mxu0 }
 0x1ef   : > { %v4039_v11 = vpop.f32.mrf.mxu1  ;;  %2968 = vst.msk [vmem:[%s4691_s21 + $0x660] sm:$0xff] %vm659_vm0, %v2211_v51  ;;  %v2226_v7 = vadd.f32 %v3959_v0, %v4817_v31 }
 0x1f0   : > { %3016 = vst.msk [vmem:[%s4691_s21 + $0x760] sm:$0xff] %vm659_vm0, %v2486_v63  ;;  %v2501_v43 = vadd.f32 %v4039_v11, %v4817_v31  ;;  %v2220_v25 = vpop.f32.mrf.mxu0 }
 0x1f1   : > { %v2495_v12 = vpop.f32.mrf.mxu1  ;;  %2971 = vst.msk [vmem:[%s4691_s21 + $0x678] sm:$0xff] %vm659_vm0, %v2226_v7  ;;  %v2221_v8 = vadd.f32 %v2220_v25, %v4819_v32 }
 0x1f2   : > { %3019 = vst.msk [vmem:[%s4691_s21 + $0x778] sm:$0xff] %vm659_vm0, %v2501_v43  ;;  %v2496_v15 = vadd.f32 %v2495_v12, %v4819_v32  ;;  %v3962_v3 = vpop.f32.mrf.mxu0 }
 0x1f3   : > { %v4042_v16 = vpop.f32.mrf.mxu1  ;;  %2970 = vst.msk [vmem:[%s4691_s21 + $0x670] sm:$0xff] %vm659_vm0, %v2221_v8  ;;  %v2236_v31 = vadd.f32 %v3962_v3, %v4833_v46 }
 0x1f4   : > { %3018 = vst.msk [vmem:[%s4691_s21 + $0x770] sm:$0xff] %vm659_vm0, %v2496_v15  ;;  %v2511_v19 = vadd.f32 %v4042_v16, %v4833_v46  ;;  %v2230_v27 = vpop.f32.mrf.mxu0 }
 0x1f5   : > { %v2505_v48 = vpop.f32.mrf.mxu1  ;;  %2973 = vst.msk [vmem:[%s4691_s21 + $0x688] sm:$0xff] %vm659_vm0, %v2236_v31  ;;  %v2231_v32 = vadd.f32 %v2230_v27, %v4835_v49 }
 0x1f6   : > { %3021 = vst.msk [vmem:[%s4691_s21 + $0x788] sm:$0xff] %vm659_vm0, %v2511_v19  ;;  %v2506_v28 = vadd.f32 %v2505_v48, %v4835_v49  ;;  %v3965_v29 = vpop.f32.mrf.mxu0 }
 0x1f7   : > { %v4045_v36 = vpop.f32.mrf.mxu1  ;;  %2972 = vst.msk [vmem:[%s4691_s21 + $0x680] sm:$0xff] %vm659_vm0, %v2231_v32  ;;  %v2246_v46 = vadd.f32 %v3965_v29, %v4849_v10 }
 0x1f8   : > { %3020 = vst.msk [vmem:[%s4691_s21 + $0x780] sm:$0xff] %vm659_vm0, %v2506_v28  ;;  %v2521_v23 = vadd.f32 %v4045_v36, %v4849_v10  ;;  %v2240_v33 = vpop.f32.mrf.mxu0 }
 0x1f9   : > { %v2515_v39 = vpop.f32.mrf.mxu1  ;;  %2975 = vst.msk [vmem:[%s4691_s21 + $0x698] sm:$0xff] %vm659_vm0, %v2246_v46  ;;  %v2241_v49 = vadd.f32 %v2240_v33, %v4851_v13 }
 0x1fa   : > { %3023 = vst.msk [vmem:[%s4691_s21 + $0x798] sm:$0xff] %vm659_vm0, %v2521_v23  ;;  %v2516_v34 = vadd.f32 %v2515_v39, %v4851_v13  ;;  %v3968_v24 = vpop.f32.mrf.mxu0 }
 0x1fb   : > { %v4048_v38 = vpop.f32.mrf.mxu1  ;;  %2974 = vst.msk [vmem:[%s4691_s21 + $0x690] sm:$0xff] %vm659_vm0, %v2241_v49  ;;  %v2256_v10 = vadd.f32 %v3968_v24, %v4865_v22 }
 0x1fc   : > { %3022 = vst.msk [vmem:[%s4691_s21 + $0x790] sm:$0xff] %vm659_vm0, %v2516_v34  ;;  %v2531_v41 = vadd.f32 %v4048_v38, %v4865_v22  ;;  %v2250_v42 = vpop.f32.mrf.mxu0 }
 0x1fd   : > { %v2525_v40 = vpop.f32.mrf.mxu1  ;;  %2977 = vst.msk [vmem:[%s4691_s21 + $0x6a8] sm:$0xff] %vm659_vm0, %v2256_v10  ;;  %v2251_v13 = vadd.f32 %v2250_v42, %v4867_v4 }
 0x1fe   : > { %3025 = vst.msk [vmem:[%s4691_s21 + $0x7a8] sm:$0xff] %vm659_vm0, %v2531_v41  ;;  %v2526_v53 = vadd.f32 %v2525_v40, %v4867_v4  ;;  %v3971_v62 = vpop.f32.mrf.mxu0 }
 0x1ff   : > { %v4051_v1 = vpop.f32.mrf.mxu1  ;;  %2976 = vst.msk [vmem:[%s4691_s21 + $0x6a0] sm:$0xff] %vm659_vm0, %v2251_v13  ;;  %v2266_v22 = vadd.f32 %v3971_v62, %v4881_v30 }
 0x200   : > { %3024 = vst.msk [vmem:[%s4691_s21 + $0x7a0] sm:$0xff] %vm659_vm0, %v2526_v53  ;;  %v2541_v37 = vadd.f32 %v4051_v1, %v4881_v30  ;;  %v2260_v2 = vpop.f32.mrf.mxu0 }
 0x201   : > { %v2535_v5 = vpop.f32.mrf.mxu1  ;;  %2979 = vst.msk [vmem:[%s4691_s21 + $0x6b8] sm:$0xff] %vm659_vm0, %v2266_v22  ;;  %v2261_v4 = vadd.f32 %v2260_v2, %v4883_v35 }
 0x202   : > { %3027 = vst.msk [vmem:[%s4691_s21 + $0x7b8] sm:$0xff] %vm659_vm0, %v2541_v37  ;;  %v2536_v6 = vadd.f32 %v2535_v5, %v4883_v35  ;;  %v3974_v58 = vpop.f32.mrf.mxu0 }
 0x203   : > { %v4054_v9 = vpop.f32.mrf.mxu1  ;;  %2978 = vst.msk [vmem:[%s4691_s21 + $0x6b0] sm:$0xff] %vm659_vm0, %v2261_v4  ;;  %v2276_v30 = vadd.f32 %v3974_v58, %v4897_v54 }
 0x204   : > { %3026 = vst.msk [vmem:[%s4691_s21 + $0x7b0] sm:$0xff] %vm659_vm0, %v2536_v6  ;;  %v2551_v14 = vadd.f32 %v4054_v9, %v4897_v54  ;;  %v2270_v44 = vpop.f32.mrf.mxu0 }
 0x205   : > { %v2545_v61 = vpop.f32.mrf.mxu1  ;;  %2981 = vst.msk [vmem:[%s4691_s21 + $0x6c8] sm:$0xff] %vm659_vm0, %v2276_v30  ;;  %v2271_v35 = vadd.f32 %v2270_v44, %v4899_v57 }
 0x206   : > { %3029 = vst.msk [vmem:[%s4691_s21 + $0x7c8] sm:$0xff] %vm659_vm0, %v2551_v14  ;;  %v2546_v18 = vadd.f32 %v2545_v61, %v4899_v57  ;;  %v3977_v52 = vpop.f32.mrf.mxu0 }
 0x207   : > { %v4057_v21 = vpop.f32.mrf.mxu1  ;;  %2980 = vst.msk [vmem:[%s4691_s21 + $0x6c0] sm:$0xff] %vm659_vm0, %v2271_v35  ;;  %v2286_v54 = vadd.f32 %v3977_v52, %v4913_v55 }
 0x208   : > { %3028 = vst.msk [vmem:[%s4691_s21 + $0x7c0] sm:$0xff] %vm659_vm0, %v2546_v18  ;;  %v2561_v47 = vadd.f32 %v4057_v21, %v4913_v55  ;;  %v2280_v59 = vpop.f32.mrf.mxu0 }
 0x209   : > { %v2555_v60 = vpop.f32.mrf.mxu1  ;;  %2983 = vst.msk [vmem:[%s4691_s21 + $0x6d8] sm:$0xff] %vm659_vm0, %v2286_v54  ;;  %v2281_v57 = vadd.f32 %v2280_v59, %v4915_v56 }
 0x20a   : > { %3031 = vst.msk [vmem:[%s4691_s21 + $0x7d8] sm:$0xff] %vm659_vm0, %v2561_v47  ;;  %v2556_v17 = vadd.f32 %v2555_v60, %v4915_v56  ;;  %v3980_v51 = vpop.f32.mrf.mxu0 }
 0x20b   : > { %v4060_v63 = vpop.f32.mrf.mxu1  ;;  %2982 = vst.msk [vmem:[%s4691_s21 + $0x6d0] sm:$0xff] %vm659_vm0, %v2281_v57  ;;  %v2296_v55 = vadd.f32 %v3980_v51, %v4929_v26 }
 0x20c   : > { %3030 = vst.msk [vmem:[%s4691_s21 + $0x7d0] sm:$0xff] %vm659_vm0, %v2556_v17  ;;  %v2571_v0 = vadd.f32 %v4060_v63, %v4929_v26  ;;  %v2290_v11 = vpop.f32.mrf.mxu0 }
 0x20d   : > { %v2565_v7 = vpop.f32.mrf.mxu1  ;;  %2985 = vst.msk [vmem:[%s4691_s21 + $0x6e8] sm:$0xff] %vm659_vm0, %v2296_v55  ;;  %v2291_v56 = vadd.f32 %v2290_v11, %v4931_v20 }
 0x20e   : > { %3033 = vst.msk [vmem:[%s4691_s21 + $0x7e8] sm:$0xff] %vm659_vm0, %v2571_v0  ;;  %v2566_v43 = vadd.f32 %v2565_v7, %v4931_v20  ;;  %v3983_v25 = vpop.f32.mrf.mxu0 }
 0x20f   : > { %v4063_v12 = vpop.f32.mrf.mxu1  ;;  %2984 = vst.msk [vmem:[%s4691_s21 + $0x6e0] sm:$0xff] %vm659_vm0, %v2291_v56  ;;  %v2306_v26 = vadd.f32 %v3983_v25, %v4945_v45 }
 0x210   : > { %3032 = vst.msk [vmem:[%s4691_s21 + $0x7e0] sm:$0xff] %vm659_vm0, %v2566_v43  ;;  %v2581_v8 = vadd.f32 %v4063_v12, %v4945_v45  ;;  %v2300_v15 = vpop.f32.mrf.mxu0 }
 0x211   : > { %v2575_v3 = vpop.f32.mrf.mxu1  ;;  %2987 = vst.msk [vmem:[%s4691_s21 + $0x6f8] sm:$0xff] %vm659_vm0, %v2306_v26  ;;  %v2301_v16 = vadd.f32 %v2300_v15, %v4947_v50 }
 0x212   : > { %3035 = vst.msk [vmem:[%s4691_s21 + $0x7f8] sm:$0xff] %vm659_vm0, %v2581_v8  ;;  %v2576_v20 = vadd.f32 %v2575_v3, %v4947_v50 }
 0x213   : > { %2986 = vst.msk [vmem:[%s4691_s21 + $0x6f0] sm:$0xff] %vm659_vm0, %v2301_v16 }
 0x214   : > { %3034 = vst.msk [vmem:[%s4691_s21 + $0x7f0] sm:$0xff] %vm659_vm0, %v2576_v20 }
 0x215 PF: > { %s14_s12 = sadd.s32 1, %s4156_s12  }
 0x216   : > { %p11_p1 = scmp.ge.s32.totalorder %s14_s12, 4  }
 0x218   :  { %13 = sbr.rel (!%p11_p1) target bundleno = 1 (0x1), region = 81 }
 0x21d   :  { %2641 = vsyncpa [#allocation3], 1 }
 0x21e   :  { %2643 = vsyncpa [#allocation3 + $0x1], 1 }

</bundles_post_ra>
